<compile_context>
chip_gen: v6e
topology: v6e:2x2x1
jax: 0.10.0
libtpu: 0.0.40
codegen_flags: <defaults>
</compile_context>

<pallas_src>
import functools
import math

import jax
import jax.numpy as jnp
from jax.experimental import pallas as pl
from jax.experimental.pallas import tpu as pltpu


# ----------------------------------------------------------------------------
# Kernel: one full Encoder forward (one batch) per grid step, VMEM-resident.
# ----------------------------------------------------------------------------
def encoder_kernel(x_ref, w1_ref, b1_ref, w2_ref, b2_ref,
                   gamma_ref, beta_ref, whead_ref, bhead_ref,
                   noise_ref, z_ref, *, latent_dim):
    out_pad = z_ref.shape[-1]                       # lane-padded output width (128)

    x = x_ref[...]                                  # (B, D) bf16

    # Linear(D, 512) + LeakyReLU(0.2)   (bf16 operands, f32 accumulation)
    h1 = jnp.dot(x, w1_ref[...], preferred_element_type=jnp.float32) + b1_ref[...]
    h1 = jnp.maximum(h1, 0.2 * h1)

    # Linear(512, 512)
    h2 = jnp.dot(h1.astype(jnp.bfloat16), w2_ref[...],
                 preferred_element_type=jnp.float32) + b2_ref[...]

    # BatchNorm1d(512) -- training mode: batch mean / biased batch variance, f32.
    # Center once; fold gamma into the per-feature row scale (one row op).
    mean = jnp.mean(h2, axis=0, keepdims=True)                       # (1, 512)
    centered = h2 - mean
    var = jnp.mean(centered * centered, axis=0, keepdims=True)       # (1, 512)
    scale = jax.lax.rsqrt(var + 1e-5) * gamma_ref[...]               # (1, 512)
    h2n = centered * scale + beta_ref[...]

    # LeakyReLU(0.2)
    h3 = jnp.maximum(h2n, 0.2 * h2n)

    # Fused mu|logvar head, lane-padded to out_pad (=128) columns:
    #   lanes [0, L) -> mu, lanes [L, 2L) -> logvar, remaining lanes zero.
    head = jnp.dot(h3.astype(jnp.bfloat16), whead_ref[...],
                   preferred_element_type=jnp.float32) + bhead_ref[...]   # (B, 128)

    # Bring logvar lanes [L, 2L) onto lanes [0, L) with an exact 0/1 selection
    # matmul (sel[k, j] = 1 iff k == j + L).  Lanes >= L of lv_aligned are 0,
    # so exp() there is exactly 1 (no overflow on discarded lanes).
    k_ids = jax.lax.broadcasted_iota(jnp.int32, (out_pad, out_pad), 0)
    j_ids = jax.lax.broadcasted_iota(jnp.int32, (out_pad, out_pad), 1)
    sel = (k_ids == j_ids + latent_dim).astype(jnp.float32)
    lv_aligned = jnp.dot(head, sel, preferred_element_type=jnp.float32)
    std = jnp.exp(lv_aligned * 0.5)

    # Lane-dense store: z = noise * std + mu on lanes [0, L); noise is
    # zero-padded beyond L, and the wrapper slices off the padded lanes.
    z_ref[...] = noise_ref[...] * std + head


# ----------------------------------------------------------------------------
# Wrapper
# ----------------------------------------------------------------------------
def encoder_forward(img, params, noise, latent_dim):
    """img: (B,C,H,W) or (G,B,C,H,W); noise: (B,L) or (G,B,L).

    Returns z of shape (B,L) / (G,B,L).  Each of the G stacked batches gets its
    own BatchNorm batch statistics, identical to G separate Encoder.forward
    calls -- the grid only amortizes the weight DMA / launch overhead.
    """
    single = (img.ndim == 4)
    if single:
        img = img[None]
        noise = noise[None]
    G, B = img.shape[0], img.shape[1]
    D = math.prod(img.shape[2:])
    hidden = params["w1"].shape[1]
    out_pad = params["bhead"].shape[-1]                    # 128 (lane-dense output)

    x2d = img.reshape(G * B, D).astype(jnp.bfloat16)       # matmul operand in bf16
    noise_pad = jnp.pad(noise.reshape(G * B, latent_dim).astype(jnp.float32),
                        ((0, 0), (0, out_pad - latent_dim)))

    # Weights / biases / BN params: full block, constant index_map -> fetched
    # once per call, VMEM-resident across all G grid steps.
    weight_specs = [pl.BlockSpec(params[k].shape, lambda g: (0, 0))
                    for k in ("w1", "b1", "w2", "b2",
                              "gamma", "beta", "whead", "bhead")]
    in_specs = ([pl.BlockSpec((B, D), lambda g: (g, 0))]        # x: per-batch block
                + weight_specs
                + [pl.BlockSpec((B, out_pad), lambda g: (g, 0))])  # noise
    out_spec = pl.BlockSpec((B, out_pad), lambda g: (g, 0))

    # Advisory cost estimate: tiny, memory-bound custom call.
    flops = 2 * G * B * (D * hidden + hidden * hidden
                         + hidden * out_pad + out_pad * out_pad)
    weight_bytes = ((params["w1"].size + params["w2"].size + params["whead"].size) * 2
                    + (params["b1"].size + params["b2"].size + params["gamma"].size
                       + params["beta"].size + params["bhead"].size) * 4)
    act_bytes = x2d.size * 2 + noise_pad.size * 4 + G * B * out_pad * 4
    transcendentals = G * (B * out_pad + hidden)

    z_full = pl.pallas_call(
        functools.partial(encoder_kernel, latent_dim=latent_dim),
        grid=(G,),
        in_specs=in_specs,
        out_specs=out_spec,
        out_shape=jax.ShapeDtypeStruct((G * B, out_pad), jnp.float32),
        compiler_params=pltpu.CompilerParams(
            dimension_semantics=("parallel",),      # v7x: shard batches over 2 TCs
            vmem_limit_bytes=32 * 1024 * 1024,
        ),
        cost_estimate=pl.CostEstimate(
            flops=flops,
            transcendentals=transcendentals,
            bytes_accessed=weight_bytes + act_bytes),
    )(x2d, params["w1"], params["b1"], params["w2"], params["b2"],
      params["gamma"], params["beta"], params["whead"], params["bhead"],
      noise_pad)

    z = z_full[:, :latent_dim].reshape(G, B, latent_dim)
    return z[0] if single else z


# ----------------------------------------------------------------------------
# Pure-JAX reference (mimics kernel precision: bf16 matmul operands, f32 accum)
# ----------------------------------------------------------------------------
def encoder_reference(img_batch, params, noise_batch, latent_dim):
    B = img_batch.shape[0]
    x = img_batch.reshape(B, -1).astype(jnp.bfloat16)
    h1 = jnp.dot(x, params["w1"], preferred_element_type=jnp.float32) + params["b1"]
    h1 = jnp.maximum(h1, 0.2 * h1)
    h2 = jnp.dot(h1.astype(jnp.bfloat16), params["w2"],
                 preferred_element_type=jnp.float32) + params["b2"]
    mean = jnp.mean(h2, axis=0, keepdims=True)
    var = jnp.mean((h2 - mean) ** 2, axis=0, keepdims=True)
    h2n = (h2 - mean) * jax.lax.rsqrt(var + 1e-5) * params["gamma"] + params["beta"]
    h3 = jnp.maximum(h2n, 0.2 * h2n)
    head = jnp.dot(h3.astype(jnp.bfloat16), params["whead"],
                   preferred_element_type=jnp.float32) + params["bhead"]
    mu = head[:, :latent_dim]
    logvar = head[:, latent_dim:2 * latent_dim]
    return noise_batch * jnp.exp(logvar * 0.5) + mu


# ----------------------------------------------------------------------------
# Deterministic parameter init (PyTorch-style uniform(-1/sqrt(fan_in), ...))
# ----------------------------------------------------------------------------
def init_params(key, in_dim, hidden, latent_dim, head_pad=128):
    assert head_pad >= 2 * latent_dim and head_pad % 128 == 0

    def linear(k, fan_in, fan_out):
        kw, kb = jax.random.split(k)
        bound = 1.0 / (fan_in ** 0.5)
        w = jax.random.uniform(kw, (fan_in, fan_out), jnp.float32, -bound, bound)
        b = jax.random.uniform(kb, (1, fan_out), jnp.float32, -bound, bound)
        return w, b

    k1, k2, k3, k4 = jax.random.split(key, 4)
    w1, b1 = linear(k1, in_dim, hidden)
    w2, b2 = linear(k2, hidden, hidden)
    wmu, bmu = linear(k3, hidden, latent_dim)
    wlv, blv = linear(k4, hidden, latent_dim)

    # Fused, lane-padded mu|logvar head: [Wmu | Wlv | 0 ...] -> (hidden, head_pad)
    whead = jnp.zeros((hidden, head_pad), jnp.float32)
    whead = whead.at[:, :latent_dim].set(wmu)
    whead = whead.at[:, latent_dim:2 * latent_dim].set(wlv)
    bhead = jnp.zeros((1, head_pad), jnp.float32)
    bhead = bhead.at[:, :latent_dim].set(bmu)
    bhead = bhead.at[:, latent_dim:2 * latent_dim].set(blv)

    return {
        # matmul weights stored in bf16 (f32 MXU accumulation in-kernel)
        "w1": w1.astype(jnp.bfloat16), "b1": b1,
        "w2": w2.astype(jnp.bfloat16), "b2": b2,
        "gamma": jnp.ones((1, hidden), jnp.float32),   # BatchNorm affine weight
        "beta": jnp.zeros((1, hidden), jnp.float32),   # BatchNorm affine bias
        "whead": whead.astype(jnp.bfloat16), "bhead": bhead,
    }


if __name__ == "__main__":
    # Small shapes consistent with the module: img_shape = (1, 16, 16),
    # latent_dim = 8, batch = 8 (BatchNorm1d train mode needs batch > 1),
    # G = 4 stacked independent batches to exercise the weight-amortizing grid.
    G, B, C, H, W = 4, 8, 1, 16, 16
    HIDDEN, LATENT = 512, 8
    D = C * H * W

    key = jax.random.PRNGKey(0)
    k_img, k_noise, k_params = jax.random.split(key, 3)

    img = jax.random.normal(k_img, (G, B, C, H, W), jnp.float32)
    noise = jax.random.normal(k_noise, (G, B, LATENT), jnp.float32)  # stands in for np.random.normal
    params = init_params(k_params, D, HIDDEN, LATENT)

    # Stacked (grid) call: one kernel launch, weights DMA'd once.
    z = jax.block_until_ready(encoder_forward(img, params, noise, LATENT))
    assert z.shape == (G, B, LATENT) and z.dtype == jnp.float32
    assert bool(jnp.all(jnp.isfinite(z)))

    # Single-batch call (matches the original module's forward signature).
    z0 = jax.block_until_ready(encoder_forward(img[0], params, noise[0], LATENT))
    assert z0.shape == (B, LATENT)

    # Verify against a pure-JAX reference with matching precision.
    z_ref = jnp.stack([encoder_reference(img[g], params, noise[g], LATENT)
                       for g in range(G)])
    assert bool(jnp.allclose(z, z_ref, atol=1e-2, rtol=1e-2)), \
        float(jnp.max(jnp.abs(z - z_ref)))
    assert bool(jnp.allclose(z0, z_ref[0], atol=1e-2, rtol=1e-2))

    print("KERNEL_OK")
</pallas_src>

<mosaic_0001>
module attributes {stable_mosaic.version = 11 : i64} {
  func.func @encoder_kernel(%arg0: i32, %arg1: memref<8x256xbf16, #tpu.memory_space<vmem>>, %arg2: memref<256x512xbf16, #tpu.memory_space<vmem>>, %arg3: memref<1x512xf32, #tpu.memory_space<vmem>>, %arg4: memref<512x512xbf16, #tpu.memory_space<vmem>>, %arg5: memref<1x512xf32, #tpu.memory_space<vmem>>, %arg6: memref<1x512xf32, #tpu.memory_space<vmem>>, %arg7: memref<1x512xf32, #tpu.memory_space<vmem>>, %arg8: memref<512x128xbf16, #tpu.memory_space<vmem>>, %arg9: memref<1x128xf32, #tpu.memory_space<vmem>>, %arg10: memref<8x128xf32, #tpu.memory_space<vmem>>, %arg11: memref<8x128xf32, #tpu.memory_space<vmem>>) attributes {dimension_semantics = [#tpu.dimension_semantics<parallel>], iteration_bounds = array<i64: 4>, scalar_prefetch = 0 : i64, scratch_operands = 0 : i64, tpu.core_type = #tpu.core_type<tc>, window_params = [{transform_indices = @transform_0, window_bounds = array<i64: 8, 256>}, {pipeline_mode = #tpu.pipeline_mode<synchronous>, transform_indices = @transform_1, window_bounds = array<i64: 256, 512>}, {pipeline_mode = #tpu.pipeline_mode<synchronous>, transform_indices = @transform_2, window_bounds = array<i64: 1, 512>}, {pipeline_mode = #tpu.pipeline_mode<synchronous>, transform_indices = @transform_3, window_bounds = array<i64: 512, 512>}, {pipeline_mode = #tpu.pipeline_mode<synchronous>, transform_indices = @transform_4, window_bounds = array<i64: 1, 512>}, {pipeline_mode = #tpu.pipeline_mode<synchronous>, transform_indices = @transform_5, window_bounds = array<i64: 1, 512>}, {pipeline_mode = #tpu.pipeline_mode<synchronous>, transform_indices = @transform_6, window_bounds = array<i64: 1, 512>}, {pipeline_mode = #tpu.pipeline_mode<synchronous>, transform_indices = @transform_7, window_bounds = array<i64: 512, 128>}, {pipeline_mode = #tpu.pipeline_mode<synchronous>, transform_indices = @transform_8, window_bounds = array<i64: 1, 128>}, {transform_indices = @transform_9, window_bounds = array<i64: 8, 128>}, {transform_indices = @transform_10, window_bounds = array<i64: 8, 128>}]} {
    %c0 = arith.constant 0 : index
    %c0_0 = arith.constant 0 : index
    %0 = vector.load %arg1[%c0, %c0_0] : memref<8x256xbf16, #tpu.memory_space<vmem>>, vector<8x256xbf16>
    %c0_1 = arith.constant 0 : index
    %c0_2 = arith.constant 0 : index
    %1 = vector.load %arg2[%c0_1, %c0_2] : memref<256x512xbf16, #tpu.memory_space<vmem>>, vector<256x512xbf16>
    %cst = arith.constant dense<0.000000e+00> : vector<8x512xf32>
    %2 = tpu.matmul %0, %1, %cst {dimension_numbers = #tpu.dot_dimension_numbers<[1], [0], [0], [1], [0, 0, 1, 1], [], []>} : vector<8x256xbf16>, vector<256x512xbf16>, vector<8x512xf32> -> vector<8x512xf32>
    %c0_3 = arith.constant 0 : index
    %c0_4 = arith.constant 0 : index
    %3 = vector.load %arg3[%c0_3, %c0_4] : memref<1x512xf32, #tpu.memory_space<vmem>>, vector<1x512xf32>
    %4 = vector.broadcast %3 : vector<1x512xf32> to vector<8x512xf32>
    %5 = arith.addf %2, %4 : vector<8x512xf32>
    %cst_5 = arith.constant 2.000000e-01 : f32
    %6 = vector.broadcast %cst_5 : f32 to vector<8x512xf32>
    %7 = arith.mulf %6, %5 : vector<8x512xf32>
    %8 = arith.maximumf %5, %7 : vector<8x512xf32>
    %9 = arith.truncf %8 : vector<8x512xf32> to vector<8x512xbf16>
    %c0_6 = arith.constant 0 : index
    %c0_7 = arith.constant 0 : index
    %10 = vector.load %arg4[%c0_6, %c0_7] : memref<512x512xbf16, #tpu.memory_space<vmem>>, vector<512x512xbf16>
    %cst_8 = arith.constant dense<0.000000e+00> : vector<8x512xf32>
    %11 = tpu.matmul %9, %10, %cst_8 {dimension_numbers = #tpu.dot_dimension_numbers<[1], [0], [0], [1], [0, 0, 1, 1], [], []>} : vector<8x512xbf16>, vector<512x512xbf16>, vector<8x512xf32> -> vector<8x512xf32>
    %c0_9 = arith.constant 0 : index
    %c0_10 = arith.constant 0 : index
    %12 = vector.load %arg5[%c0_9, %c0_10] : memref<1x512xf32, #tpu.memory_space<vmem>>, vector<1x512xf32>
    %13 = vector.broadcast %12 : vector<1x512xf32> to vector<8x512xf32>
    %14 = arith.addf %11, %13 : vector<8x512xf32>
    %cst_11 = arith.constant dense<0.000000e+00> : vector<512xf32>
    %15 = vector.multi_reduction <add>, %14, %cst_11 [0] : vector<8x512xf32> to vector<512xf32>
    %16 = vector.shape_cast %15 : vector<512xf32> to vector<1x512xf32>
    %cst_12 = arith.constant 8.000000e+00 : f32
    %17 = vector.broadcast %cst_12 : f32 to vector<1x512xf32>
    %18 = arith.divf %16, %17 : vector<1x512xf32>
    %19 = vector.broadcast %18 : vector<1x512xf32> to vector<8x512xf32>
    %20 = arith.subf %14, %19 : vector<8x512xf32>
    %21 = arith.mulf %20, %20 : vector<8x512xf32>
    %cst_13 = arith.constant dense<0.000000e+00> : vector<512xf32>
    %22 = vector.multi_reduction <add>, %21, %cst_13 [0] : vector<8x512xf32> to vector<512xf32>
    %23 = vector.shape_cast %22 : vector<512xf32> to vector<1x512xf32>
    %cst_14 = arith.constant 8.000000e+00 : f32
    %24 = vector.broadcast %cst_14 : f32 to vector<1x512xf32>
    %25 = arith.divf %23, %24 : vector<1x512xf32>
    %cst_15 = arith.constant 9.99999974E-6 : f32
    %26 = vector.broadcast %cst_15 : f32 to vector<1x512xf32>
    %27 = arith.addf %25, %26 : vector<1x512xf32>
    %28 = math.rsqrt %27 : vector<1x512xf32>
    %c0_16 = arith.constant 0 : index
    %c0_17 = arith.constant 0 : index
    %29 = vector.load %arg6[%c0_16, %c0_17] : memref<1x512xf32, #tpu.memory_space<vmem>>, vector<1x512xf32>
    %30 = arith.mulf %28, %29 : vector<1x512xf32>
    %31 = vector.broadcast %30 : vector<1x512xf32> to vector<8x512xf32>
    %32 = arith.mulf %20, %31 : vector<8x512xf32>
    %c0_18 = arith.constant 0 : index
    %c0_19 = arith.constant 0 : index
    %33 = vector.load %arg7[%c0_18, %c0_19] : memref<1x512xf32, #tpu.memory_space<vmem>>, vector<1x512xf32>
    %34 = vector.broadcast %33 : vector<1x512xf32> to vector<8x512xf32>
    %35 = arith.addf %32, %34 : vector<8x512xf32>
    %cst_20 = arith.constant 2.000000e-01 : f32
    %36 = vector.broadcast %cst_20 : f32 to vector<8x512xf32>
    %37 = arith.mulf %36, %35 : vector<8x512xf32>
    %38 = arith.maximumf %35, %37 : vector<8x512xf32>
    %39 = arith.truncf %38 : vector<8x512xf32> to vector<8x512xbf16>
    %c0_21 = arith.constant 0 : index
    %c0_22 = arith.constant 0 : index
    %40 = vector.load %arg8[%c0_21, %c0_22] : memref<512x128xbf16, #tpu.memory_space<vmem>>, vector<512x128xbf16>
    %cst_23 = arith.constant dense<0.000000e+00> : vector<8x128xf32>
    %41 = tpu.matmul %39, %40, %cst_23 {dimension_numbers = #tpu.dot_dimension_numbers<[1], [0], [0], [1], [0, 0, 1, 1], [], []>} : vector<8x512xbf16>, vector<512x128xbf16>, vector<8x128xf32> -> vector<8x128xf32>
    %c0_24 = arith.constant 0 : index
    %c0_25 = arith.constant 0 : index
    %42 = vector.load %arg9[%c0_24, %c0_25] : memref<1x128xf32, #tpu.memory_space<vmem>>, vector<1x128xf32>
    %43 = vector.broadcast %42 : vector<1x128xf32> to vector<8x128xf32>
    %44 = arith.addf %41, %43 : vector<8x128xf32>
    %45 = tpu.iota {dimensions = array<i32: 0>} : vector<128x128xi32>
    %46 = tpu.iota {dimensions = array<i32: 1>} : vector<128x128xi32>
    %c8_i32 = arith.constant 8 : i32
    %47 = vector.broadcast %c8_i32 : i32 to vector<128x128xi32>
    %48 = arith.addi %46, %47 : vector<128x128xi32>
    %49 = arith.cmpi eq, %45, %48 : vector<128x128xi32>
    %50 = arith.extui %49 : vector<128x128xi1> to vector<128x128xi32>
    %51 = arith.sitofp %50 : vector<128x128xi32> to vector<128x128xf32>
    %cst_26 = arith.constant dense<0.000000e+00> : vector<8x128xf32>
    %52 = tpu.matmul %44, %51, %cst_26 {dimension_numbers = #tpu.dot_dimension_numbers<[1], [0], [0], [1], [0, 0, 1, 1], [], []>} : vector<8x128xf32>, vector<128x128xf32>, vector<8x128xf32> -> vector<8x128xf32>
    %cst_27 = arith.constant 5.000000e-01 : f32
    %53 = vector.broadcast %cst_27 : f32 to vector<8x128xf32>
    %54 = arith.mulf %52, %53 : vector<8x128xf32>
    %55 = math.exp %54 : vector<8x128xf32>
    %c0_28 = arith.constant 0 : index
    %c0_29 = arith.constant 0 : index
    %56 = vector.load %arg10[%c0_28, %c0_29] : memref<8x128xf32, #tpu.memory_space<vmem>>, vector<8x128xf32>
    %57 = arith.mulf %56, %55 : vector<8x128xf32>
    %58 = arith.addf %57, %44 : vector<8x128xf32>
    %c0_30 = arith.constant 0 : index
    %c0_31 = arith.constant 0 : index
    %59 = vector.load %arg11[%c0_30, %c0_31] : memref<8x128xf32, #tpu.memory_space<vmem>>, vector<8x128xf32>
    tpu.vector_store %arg11[%c0_30, %c0_31], %58 {strides = array<i32>} : memref<8x128xf32, #tpu.memory_space<vmem>>, vector<8x128xf32>,
    return
  }
  func.func @transform_0(%arg0: i32) -> (i32, i32) {
    %c0_i32 = arith.constant 0 : i32
    %c0_i32_0 = arith.constant 0 : i32
    return %arg0, %c0_i32 : i32, i32
  }
  func.func @transform_1(%arg0: i32) -> (i32, i32) {
    %c0_i32 = arith.constant 0 : i32
    %c0_i32_0 = arith.constant 0 : i32
    %c0_i32_1 = arith.constant 0 : i32
    return %c0_i32, %c0_i32_0 : i32, i32
  }
  func.func @transform_2(%arg0: i32) -> (i32, i32) {
    %c0_i32 = arith.constant 0 : i32
    %c0_i32_0 = arith.constant 0 : i32
    %c0_i32_1 = arith.constant 0 : i32
    return %c0_i32, %c0_i32_0 : i32, i32
  }
  func.func @transform_3(%arg0: i32) -> (i32, i32) {
    %c0_i32 = arith.constant 0 : i32
    %c0_i32_0 = arith.constant 0 : i32
    %c0_i32_1 = arith.constant 0 : i32
    return %c0_i32, %c0_i32_0 : i32, i32
  }
  func.func @transform_4(%arg0: i32) -> (i32, i32) {
    %c0_i32 = arith.constant 0 : i32
    %c0_i32_0 = arith.constant 0 : i32
    %c0_i32_1 = arith.constant 0 : i32
    return %c0_i32, %c0_i32_0 : i32, i32
  }
  func.func @transform_5(%arg0: i32) -> (i32, i32) {
    %c0_i32 = arith.constant 0 : i32
    %c0_i32_0 = arith.constant 0 : i32
    %c0_i32_1 = arith.constant 0 : i32
    return %c0_i32, %c0_i32_0 : i32, i32
  }
  func.func @transform_6(%arg0: i32) -> (i32, i32) {
    %c0_i32 = arith.constant 0 : i32
    %c0_i32_0 = arith.constant 0 : i32
    %c0_i32_1 = arith.constant 0 : i32
    return %c0_i32, %c0_i32_0 : i32, i32
  }
  func.func @transform_7(%arg0: i32) -> (i32, i32) {
    %c0_i32 = arith.constant 0 : i32
    %c0_i32_0 = arith.constant 0 : i32
    %c0_i32_1 = arith.constant 0 : i32
    return %c0_i32, %c0_i32_0 : i32, i32
  }
  func.func @transform_8(%arg0: i32) -> (i32, i32) {
    %c0_i32 = arith.constant 0 : i32
    %c0_i32_0 = arith.constant 0 : i32
    %c0_i32_1 = arith.constant 0 : i32
    return %c0_i32, %c0_i32_0 : i32, i32
  }
  func.func @transform_9(%arg0: i32) -> (i32, i32) {
    %c0_i32 = arith.constant 0 : i32
    %c0_i32_0 = arith.constant 0 : i32
    return %arg0, %c0_i32 : i32, i32
  }
  func.func @transform_10(%arg0: i32) -> (i32, i32) {
    %c0_i32 = arith.constant 0 : i32
    %c0_i32_0 = arith.constant 0 : i32
    return %arg0, %c0_i32 : i32, i32
  }
}

</mosaic_0001>

<bundles_post_ra>
// kernel: tpu_custom_call.1
= control target key start
LH: loop header
LB: loop body
LE: loop exit
PB: predicated region body
PF: predicated region fallthrough
CT: control target
= control target key end

     0   :  { %s4251_s0 = inlined_call_operand.hbm [shape: bf16[32,256], index: 0, kind: input, shape index: {}]   ;;  %s4252_s1 = inlined_call_operand.hbm [shape: bf16[256,512], index: 1, kind: input, shape index: {}]   ;;  %s4253_s2 = inlined_call_operand.hbm [shape: f32[1,512], index: 2, kind: input, shape index: {}]   ;;  %s4254_s3 = inlined_call_operand.hbm [shape: bf16[512,512], index: 3, kind: input, shape index: {}]   ;;  %s4255_s4 = inlined_call_operand.vmem [shape: f32[1,512], index: 4, kind: input, shape index: {}]   ;;  %s4256_s5 = inlined_call_operand.vmem [shape: f32[1,512], index: 5, kind: input, shape index: {}]   ;;  %s4257_s6 = inlined_call_operand.hbm [shape: f32[1,512], index: 6, kind: input, shape index: {}]   ;;  %s4258_s7 = inlined_call_operand.hbm [shape: bf16[512,128], index: 7, kind: input, shape index: {}]   ;;  %s4259_s8 = inlined_call_operand.vmem [shape: f32[1,128], index: 8, kind: input, shape index: {}]   ;;  %s4260_s9 = inlined_call_operand.hbm [shape: f32[32,128], index: 9, kind: input, shape index: {}]   ;;  %s4261_s10 = inlined_call_operand.hbm [shape: f32[32,128], index: 10, kind: output, shape index: {}]  }
   0x1   :  { %4280 = sst [smem:[#allocation27_spill]] %s4252_s1 }
   0x2   :  { %4281 = sst [smem:[#allocation28_spill]] %s4254_s3 }
   0x3   :  { %4282 = sst [smem:[#allocation29_spill]] %s4261_s10 }
   0x4   :  { %15 = vsyncpa [#allocation3], 0 }
   0x5   :  { %17 = vsyncpa [#allocation3 + $0x1], 0 }
   0x6   :  { %18 = vsyncpa [#allocation6], 0 }
   0x7   :  { %19 = vsyncpa [#allocation9], 0 }
   0x8   :  { %20 = vsyncpa [#allocation12], 0 }
   0x9   :  { %21 = vsyncpa [#allocation4], 0 }
   0xa   :  { %23 = vsyncpa [#allocation4 + $0x1], 0  ;;  %s3898_s13 = smov 0   ;;  %s3900_s14 = smov 0  }
   0xb   :  { %s3902_s15 = smov 0   ;;  %s3904_s16 = smov 0  }
   0xc LB: > { %4283 = sst [smem:[#allocation21_spill]] %s3814_s13  ;;  %s3828_s17 = smov [#allocation5]   ;;  %s3826_s16 = sphi %s3904_s16, %s4319_s16   ;;  %s3822_s15 = sphi %s3902_s15, %s4321_s15   ;;  %s3818_s14 = sphi %s3900_s14, %s4323_s14   ;;  %s3814_s13 = sphi %s3898_s13, %s4322_s13  }
   0xd   : > { %4284 = sst [smem:[#allocation22_spill]] %s3822_s15  ;;  %s292_s18 = sshll.u32 %s3828_s17, 4  ;;  %s293_s18 = int_to_ptr.vmem [resolvable:$true] %s292_s18 }
   0xe   : > { %4285 = sst [smem:[#allocation23_spill]] %s3826_s16  ;;  %s3919_s19 = sadd.s32 4294967295, %s3826_s16  }
   0xf   : > { %p2740_p0 = scmp.ge.s32.totalorder %s3826_s16, 1  ;;  %p4262_p1 = scmp.eq.s32.totalorder %s3919_s19, 0 }
  0x10   : > { %p280_p2 = scmp.lt.s32.totalorder %s3826_s16, 5  ;;  %s3829_s21 = smov [#allocation8]  }
  0x11   : > { %s316_s22 = sshll.u32 %s3829_s21, 4  ;;  %s3571_s25 = scalar_lea.vmem %s293_s18, 8192  ;;  %s317_s22 = int_to_ptr.vmem [resolvable:$true] %s316_s22 }
  0x12   : > { %p3924_p3 = pnand %p2740_p0, %p280_p2  ;;  %p3572_p7 = scmp.ne.s32.totalorder %s293_s18, %s3571_s25 }
  0x13   : > { %p3579_p10 = scmp.lt.s32.totalorder %s293_s18, %s293_s18  ;;  %p3580_p11 = scmp.lt.s32.totalorder %s3571_s25, %s3571_s25 }
  0x14   : > { %s4286_s20 = scalar_select %p3924_p3, 1, 0 }
  0x15   : > { %p3145_p4 = pneg %p3924_p3  ;;  %p3581_p12 = por %p3580_p11, %p3579_p10 }
  0x17   : > { %p3932_p5 = pnand %p3145_p4, %p4262_p1 }
  0x19   : > { %s4287_s23 = scalar_select %p3932_p5, 1, 0 }
  0x1a   : > { %p3938_p6 = pneg %p3932_p5 }
  0x1c   : > { %s4288_s24 = scalar_select %p3938_p6, 1, 0 }
  0x1d   : > { %p3574_p8 = pnand %p3572_p7, %p3938_p6 }
  0x1f   : > { %p3575_p9 = pneg %p3574_p8 }
  0x21   : > { %p3582_p13 = pnand %p3581_p12, %p3575_p9 }
  0x23   : > { %3585 = shalt.err (!%p3582_p13)
}
  0x24   : > { %s3830_s26 = smov 256   ;;  %s3831_s27 = smov 16  }
  0x25   : > { %s4289_s1 = sld [smem:[#allocation27_spill]]  ;;  %s3597_s30 = scalar_lea.vmem %s317_s22, 16384 }
  0x26   : > { %p3598_p0 = scmp.ne.s32.totalorder %s317_s22, %s3597_s30  ;;  %p3605_p7 = scmp.lt.s32.totalorder %s317_s22, %s317_s22 }
  0x27   : > { %p3606_p8 = scmp.lt.s32.totalorder %s3597_s30, %s3597_s30 }
  0x28   : > { %p3600_p2 = pnand %p3598_p0, %p3938_p6 }
  0x29   : > { %p3607_p1 = por %p3606_p8, %p3605_p7 }
  0x2a   : > { %p3601_p4 = pneg %p3600_p2 }
  0x2b   : > { %3148 = dma.hbm_to_vmem [thread:$0]  (!%p3932_p5), %s4289_s1, 8192, %s293_s18, [#allocation6], %s3830_s26, %s3830_s26, %s3831_s27  }
  0x2c   : > { %p3608_p10 = pnand %p3607_p1, %p3601_p4 }
  0x2e   : > { %3611 = shalt.err (!%p3608_p10)
}
  0x2f   : > { %s4290_s3 = sld [smem:[#allocation28_spill]]  ;;  %s2739_s17 = sadd.s32 4294967294, %s3826_s16  }
  0x30   : > { %s3958_s18 = sadd.s32 1, %s3826_s16   ;;  %s36_s25 = sadd.s32 1, %s3822_s15 }
  0x31   : > { %4291 = sst [smem:[#allocation24_spill]] %s3958_s18  ;;  %s33_s21 = ssub.s32 %s3826_s16, %s3958_s18 }
  0x32   : > { %p34_p1 = scmp.eq.s32.totalorder %s33_s21, 0  ;;  %p43_p9 = scmp.ne.s32.totalorder %s3822_s15, %s3818_s14 }
  0x33   : > { %p44_p11 = scmp.eq.s32.totalorder %s3826_s16, 0  ;;  %p49_p12 = scmp.ne.s32.totalorder %s3818_s14, %s3814_s13 }
  0x34   : > { %s3969_s28 = scalar_select %p34_p1, %s3822_s15, %s36_s25  }
  0x35   : > { %3154 = dma.hbm_to_vmem [thread:$0]  (!%p3932_p5), %s4290_s3, 16384, %s317_s22, [#allocation9], %s3830_s26, %s3830_s26, %s3831_s27  }
  0x36   : > { %4292 = sst [smem:[#allocation25_spill]] %s3969_s28  ;;  %p3971_p13 = por %p44_p11, %p43_p9 }
  0x37   : > { %p4294_p0 = scmp.eq.s32.totalorder %s3919_s19, 0  ;;  %p267_p4 = scmp.eq.s32.totalorder %s3919_s19, 3 }
  0x38   : > { %p273_p7 = scmp.eq.s32.totalorder %s2739_s17, 3  ;;  %p3177_p8 = scmp.lt.s32.totalorder %s3826_s16, 4 }
  0x39   : > { %p3977_p2 = por %p4294_p0, %p49_p12  ;;  %s363_s26 = sand.u32 1, %s3826_s16  }
  0x3a   : > { %p3984_p10 = por %p267_p4, %p43_p9  ;;  %p3988_p1 = por %p273_p7, %p49_p12 }
  0x3b   : > { %s4295_s22 = scalar_select %p3977_p2, 1, 0 }
  0x3c   : > { %s4296_s27 = scalar_select %p3984_p10, 1, 0 }
  0x3d   : > { %s4297_s30 = scalar_select %p3988_p1, 1, 0 }
  0x3e   : > { %s365_s11 = sand.u32 1, %s3822_s15   ;;  %s3022_s21 = sshll.u32 %s3826_s16, 7 }
  0x3f   : > { %4298 = sst [smem:[#allocation26_spill]] %s4297_s30  ;;  %s3993_s12 = sshll.u32 %s365_s11, 3 }
  0x40   : > { %s3999_s3 = scalar_lea.hbm %s4251_s0, %s3022_s21  ;;  %s367_s17 = scalar_lea.vmem [#allocation2], %s3993_s12 }
  0x41   : > { %s375_s28 = sshll.u32 %s367_s17, 4  ;;  %p4004_p9 = pnand %p3177_p8, %p3971_p13  ;;  %s376_s28 = int_to_ptr.vmem [resolvable:$true] %s375_s28 }
  0x42   : > { %s4011_s30 = scalar_lea.hbm %s4260_s9, %s3022_s21  ;;  %s4013_s1 = scalar_lea.sflag [#allocation3], %s363_s26 }
  0x43   : > { %s4299_s18 = scalar_select %p4004_p9, 1, 0 }
  0x44   : > { %s3612_s25 = scalar_lea.hbm %s3999_s3, 128  ;;  %p4277_p12 = pneg %p4004_p9 }
  0x45   : > { %p3613_p11 = scmp.ne.s32.totalorder %s3999_s3, %s3612_s25  ;;  %s3617_s13 = scalar_lea.hbm %s4251_s0, 512 }
  0x46   : > { %p3618_p4 = scmp.lt.s32.totalorder %s3999_s3, %s4251_s0  ;;  %p3619_p7 = scmp.lt.s32.totalorder %s3617_s13, %s3612_s25 }
  0x47   : > { %p3615_p13 = pnand %p4277_p12, %p3613_p11 }
  0x48   : > { %p3620_p8 = por %p3619_p7, %p3618_p4 }
  0x49   : > { %p3616_p0 = pneg %p3615_p13 }
  0x4b   : > { %p3621_p1 = pnand %p3620_p8, %p3616_p0 }
  0x4d   : > { %3624 = shalt.err (!%p3621_p1)
}
  0x4e   : > { %s3625_s15 = scalar_lea.vmem %s376_s28, 128  ;;  %s3832_s26 = smov [#allocation2]  }
  0x4f   : > { %p3626_p10 = scmp.ne.s32.totalorder %s376_s28, %s3625_s15  ;;  %s3630_s21 = sshll.u32 %s3832_s26, 4  ;;  %s3631_s21 = int_to_ptr.vmem [resolvable:$false] %s3630_s21 }
  0x50   : > { %s3632_s11 = scalar_lea.vmem %s3631_s21, 256  ;;  %p3633_p13 = scmp.lt.s32.totalorder %s376_s28, %s3631_s21 }
  0x51   : > { %p3628_p2 = pnand %p3626_p10, %p4277_p12  ;;  %p3634_p3 = scmp.lt.s32.totalorder %s3632_s11, %s3625_s15 }
  0x53   : > { %p3629_p11 = pneg %p3628_p2  ;;  %p3635_p5 = por %p3634_p3, %p3633_p13 }
  0x55   : > { %p3636_p6 = pnand %p3635_p5, %p3629_p11 }
  0x57   : > { %3639 = shalt.err (!%p3636_p6)
}
  0x58   : > { %3164 = dma.hbm_to_vmem [thread:$0]  (!%p4004_p9), %s3999_s3, 128, %s376_s28, %s4013_s1  }
  0x59   : > { %s3833_s10 = smov [#allocation7]   ;;  %s3834_s16 = smov [#allocation10]  }
  0x5a   : > { %s306_s13 = sshll.u32 %s3833_s10, 4  ;;  %s336_s25 = sshll.u32 %s3834_s16, 4  ;;  %s307_s13 = int_to_ptr.vmem [resolvable:$true] %s306_s13  ;;  %s337_s25 = int_to_ptr.vmem [resolvable:$true] %s336_s25 }
  0x5b   : > { %s3651_s29 = scalar_lea.vmem %s307_s13, 64  ;;  %p4300_p10 = scmp.ne.s32.totalorder %s4288_s24, 0 }
  0x5c   : > { %p3652_p2 = scmp.ne.s32.totalorder %s307_s13, %s3651_s29  ;;  %p3659_p3 = scmp.lt.s32.totalorder %s307_s13, %s307_s13 }
  0x5d   : > { %p3660_p5 = scmp.lt.s32.totalorder %s3651_s29, %s3651_s29 }
  0x5e   : > { %p3654_p1 = pnand %p3652_p2, %p4300_p10 }
  0x5f   : > { %p3661_p6 = por %p3660_p5, %p3659_p3 }
  0x60   : > { %p3655_p0 = pneg %p3654_p1 }
  0x62   : > { %p3662_p4 = pnand %p3661_p6, %p3655_p0 }
  0x64   : > { %3665 = shalt.err (!%p3662_p4)
}
  0x65   : > { %p4301_p7 = scmp.ne.s32.totalorder %s4287_s23, 0  ;;  %s3677_s28 = scalar_lea.vmem %s337_s25, 64 }
  0x66   : > { %p3678_p8 = scmp.ne.s32.totalorder %s337_s25, %s3677_s28  ;;  %p3685_p12 = scmp.lt.s32.totalorder %s337_s25, %s337_s25 }
  0x67   : > { %3151 = dma.hbm_to_vmem [thread:$0]  (!%p4301_p7), %s4253_s2, 64, %s307_s13, [#allocation6]  }
  0x68   : > { %p3680_p11 = pnand %p3678_p8, %p4300_p10  ;;  %p3686_p2 = scmp.lt.s32.totalorder %s3677_s28, %s3677_s28 }
  0x6a   : > { %p3681_p13 = pneg %p3680_p11  ;;  %p3687_p1 = por %p3686_p2, %p3685_p12 }
  0x6c   : > { %p3688_p9 = pnand %p3687_p1, %p3681_p13 }
  0x6e   : > { %3691 = shalt.err (!%p3688_p9)
}
  0x6f   : > { %3157 = dma.hbm_to_vmem [thread:$0]  (!%p4301_p7), %s4257_s6, 64, %s337_s25, [#allocation9]  }
  0x70   : > { %s3835_s21 = smov [#allocation11]   ;;  %s386_s10 = scalar_lea.vmem [#allocation13], %s3993_s12 }
  0x71   : > { %s346_s11 = sshll.u32 %s3835_s21, 4  ;;  %s393_s13 = sshll.u32 %s386_s10, 4  ;;  %s347_s11 = int_to_ptr.vmem [resolvable:$true] %s346_s11  ;;  %s394_s13 = int_to_ptr.vmem [resolvable:$true] %s393_s13 }
  0x72   : > { %s3703_s16 = scalar_lea.vmem %s347_s11, 4096  ;;  %p3711_p5 = scmp.lt.s32.totalorder %s347_s11, %s347_s11 }
  0x73   : > { %p3704_p0 = scmp.ne.s32.totalorder %s347_s11, %s3703_s16  ;;  %p3712_p9 = scmp.lt.s32.totalorder %s3703_s16, %s3703_s16 }
  0x75   : > { %p3706_p3 = pnand %p3704_p0, %p4300_p10  ;;  %p3713_p6 = por %p3712_p9, %p3711_p5 }
  0x77   : > { %p3707_p12 = pneg %p3706_p3 }
  0x79   : > { %p3714_p4 = pnand %p3713_p6, %p3707_p12 }
  0x7b   : > { %3717 = shalt.err (!%p3714_p4)
}
  0x7c   : > { %s3836_s29 = smov 64   ;;  %s3837_s25 = smov 4  }
  0x7d   : > { %3160 = dma.hbm_to_vmem [thread:$0]  (!%p4301_p7), %s4258_s7, 4096, %s347_s11, [#allocation12], %s3836_s29, %s3836_s29, %s3837_s25  }
  0x7e   : > { %s3718_s24 = scalar_lea.hbm %s4011_s30, 128  ;;  %p4302_p8 = scmp.ne.s32.totalorder %s4299_s18, 0 }
  0x7f   : > { %p3719_p10 = scmp.ne.s32.totalorder %s4011_s30, %s3718_s24  ;;  %s3723_s15 = scalar_lea.hbm %s4260_s9, 512 }
  0x80   : > { %p4303_p11 = pneg %p4302_p8  ;;  %p3724_p1 = scmp.lt.s32.totalorder %s4011_s30, %s4260_s9 }
  0x81   : > { %p3725_p0 = scmp.lt.s32.totalorder %s3723_s15, %s3718_s24 }
  0x82   : > { %p3721_p13 = pnand %p3719_p10, %p4303_p11 }
  0x83   : > { %p3726_p3 = por %p3725_p0, %p3724_p1 }
  0x84   : > { %p3722_p2 = pneg %p3721_p13 }
  0x86   : > { %p3727_p12 = pnand %p3726_p3, %p3722_p2 }
  0x88   : > { %3730 = shalt.err (!%p3727_p12)
}
  0x89   : > { %s3731_s23 = scalar_lea.vmem %s394_s13, 128  ;;  %p4304_p5 = pmov %p4303_p11 }
  0x8a   : > { %p3732_p7 = scmp.ne.s32.totalorder %s394_s13, %s3731_s23  ;;  %s3838_s11 = smov [#allocation13]  }
  0x8b   : > { %s3736_s10 = sshll.u32 %s3838_s11, 4  ;;  %s3737_s10 = int_to_ptr.vmem [resolvable:$false] %s3736_s10 }
  0x8c   : > { %p3734_p9 = pnand %p3732_p7, %p4304_p5  ;;  %s3738_s16 = scalar_lea.vmem %s3737_s10, 256 }
  0x8d   : > { %p3739_p4 = scmp.lt.s32.totalorder %s394_s13, %s3737_s10  ;;  %p3740_p10 = scmp.lt.s32.totalorder %s3738_s16, %s3731_s23 }
  0x8e   : > { %p3735_p6 = pneg %p3734_p9 }
  0x8f   : > { %p3741_p11 = por %p3740_p10, %p3739_p4 }
  0x91   : > { %p3742_p13 = pnand %p3741_p11, %p3735_p6 }
  0x93   : > { %3745 = shalt.err (!%p3742_p13)
}
  0x94   : > { %3167 = dma.hbm_to_vmem [thread:$0]  (!%p4302_p8), %s4011_s30, 128, %s394_s13, %s4013_s1  }
  0x95   : > { %p4305_p2 = scmp.ne.s32.totalorder %s4286_s20, 0 }
  0x96   : > { %s404_s29 = sand.u32 (!%p4305_p2), 1, %s3919_s19   ;;  %s406_s25 = sand.u32 (!%p4305_p2), 1, %s3818_s14  }
  0x97   : > { %402 = sbr.rel (%p4305_p2) target bundleno = 1191 (0x4a7), region = 60  ;;  %s4083_s12 = sshll.u32 (!%p4305_p2), %s406_s25, 3 }
  0x98   : > { %s405_s17 = scalar_lea.sflag (!%p4305_p2), [#allocation3], %s404_s29  ;;  %s408_s24 = scalar_lea.vmem (!%p4305_p2), [#allocation2], %s4083_s12 }
  0x99   : > { %p4306_p1 = scmp.ne.s32.totalorder (!%p4305_p2), %s4295_s22, 0 }
  0x9c   : > { %3789 = dma.done.wait (%p4306_p1), %s405_s17, 128  }
  0x9d   : > { %3791 = vsyncadd (%p4306_p1), %s405_s17, 4294967168  ;;  %p4307_p8 = scmp.eq.s32.totalorder %s3919_s19, 0 }
  0x9f   : > { %3793 = dma.done.wait (%p4307_p8), [#allocation6], 8256   ;;  %p4308_p0 = pmov %p4307_p8 }
  0xa1   : > { %3795 = vsyncadd (%p4308_p0), [#allocation6], 4294959040  ;;  %p4309_p3 = pmov %p4308_p0 }
  0xa2   : > { %p4310_p12 = pmov %p4308_p0 }
  0xa3   : > { %3797 = dma.done.wait (%p4309_p3), [#allocation9], 16448  }
  0xa4   : > { %3799 = vsyncadd (%p4310_p12), [#allocation9], 4294950848  ;;  %p4311_p7 = pmov %p4308_p0 }
  0xa5   : > { %p4312_p5 = pmov %p4308_p0 }
  0xa6   : > { %3801 = dma.done.wait (%p4311_p7), [#allocation12], 4096  }
  0xa7   : > { %3803 = vsyncadd (%p4312_p5), [#allocation12], 4294963200  ;;  %s437_s20 = scalar_lea.vmem [#allocation13], %s4083_s12 }
  0xa8   : > { %3805 = dma.done.wait (%p4306_p1), %s405_s17, 128  }
  0xa9   : > { %3807 = vsyncadd (%p4306_p1), %s405_s17, 4294967168  ;;  %v3228_v0 = vld [vmem:[#allocation5 + $0xe4] ss:$16 sps:$4 sm:$0xff]   ;;  %v3230_v1 = vld [vmem:[#allocation5 + $0xec] ss:$16 sps:$4 sm:$0xff]   ;;  %vm3841_vm15 = vmmov 0  }
  0xaa   : > { %894 = vmatprep.subr.bf16.mxu0 %v3228_v0  ;;  %v3232_v2 = vld [vmem:[#allocation5 + $0xe0] ss:$16 sps:$4 sm:$0xff]   ;;  %v3233_v3 = vld [vmem:[#allocation5 + $0xe8] ss:$16 sps:$4 sm:$0xff]   ;;  %935 = vmatprep.subr.bf16.mxu1 %v3230_v1  ;;  %v3234_v4 = vld [vmem:[#allocation5 + $0xc4] ss:$16 sps:$4 sm:$0xff]  }
  0xab   : > { %895 = vmatpush1.bf16.msra.mxu0 %v3232_v2  ;;  %936 = vmatpush1.bf16.msra.mxu1 %v3233_v3  ;;  %v3236_v5 = vld [vmem:[#allocation5 + $0xcc] ss:$16 sps:$4 sm:$0xff]   ;;  %v3238_v6 = vld [vmem:[#allocation5 + $0xc0] ss:$16 sps:$4 sm:$0xff]   ;;  %v3239_v7 = vld [vmem:[#allocation5 + $0xc8] ss:$16 sps:$4 sm:$0xff]  }
  0xac   : > { %896 = vmatprep.subr.bf16.mxu0 %v3234_v4  ;;  %937 = vmatprep.subr.bf16.mxu1 %v3236_v5  ;;  %v3240_v8 = vld [vmem:[#allocation5 + $0xa4] ss:$16 sps:$4 sm:$0xff]   ;;  %v3242_v9 = vld [vmem:[#allocation5 + $0xac] ss:$16 sps:$4 sm:$0xff]   ;;  %v3244_v10 = vld [vmem:[#allocation5 + $0xa0] ss:$16 sps:$4 sm:$0xff]  }
  0xad   : > { %v3245_v11 = vld [vmem:[#allocation5 + $0xa8] ss:$16 sps:$4 sm:$0xff]   ;;  %v3246_v12 = vld [vmem:[#allocation5 + $0x84] ss:$16 sps:$4 sm:$0xff]   ;;  %v3248_v13 = vld [vmem:[#allocation5 + $0x8c] ss:$16 sps:$4 sm:$0xff]  }
  0xae   : > { %v3250_v14 = vld [vmem:[#allocation5 + $0x80] ss:$16 sps:$4 sm:$0xff]   ;;  %v3251_v15 = vld [vmem:[#allocation5 + $0x88] ss:$16 sps:$4 sm:$0xff]   ;;  %v3252_v16 = vld [vmem:[#allocation5 + $0x64] ss:$16 sps:$4 sm:$0xff]  }
  0xaf   : > { %897 = vmatpush1.bf16.msra.mxu0 %v3238_v6  ;;  %938 = vmatpush1.bf16.msra.mxu1 %v3239_v7  ;;  %v3254_v17 = vld [vmem:[#allocation5 + $0x6c] ss:$16 sps:$4 sm:$0xff]   ;;  %v3256_v18 = vld [vmem:[#allocation5 + $0x60] ss:$16 sps:$4 sm:$0xff]   ;;  %v3257_v19 = vld [vmem:[#allocation5 + $0x68] ss:$16 sps:$4 sm:$0xff]  }
  0xb0   : > { %898 = vmatprep.subr.bf16.mxu0 %v3240_v8  ;;  %939 = vmatprep.subr.bf16.mxu1 %v3242_v9  ;;  %v3258_v20 = vld [vmem:[#allocation5 + $0x44] ss:$16 sps:$4 sm:$0xff]   ;;  %v3260_v21 = vld [vmem:[#allocation5 + $0x4c] ss:$16 sps:$4 sm:$0xff]   ;;  %v3262_v22 = vld [vmem:[#allocation5 + $0x40] ss:$16 sps:$4 sm:$0xff]  }
  0xb1   : > { %v3263_v23 = vld [vmem:[#allocation5 + $0x48] ss:$16 sps:$4 sm:$0xff]   ;;  %v3264_v24 = vld [vmem:[#allocation5 + $0x24] ss:$16 sps:$4 sm:$0xff]   ;;  %v3266_v25 = vld [vmem:[#allocation5 + $0x2c] ss:$16 sps:$4 sm:$0xff]  }
  0xb2   : > { %v3268_v26 = vld [vmem:[#allocation5 + $0x20] ss:$16 sps:$4 sm:$0xff]   ;;  %v3269_v27 = vld [vmem:[#allocation5 + $0x28] ss:$16 sps:$4 sm:$0xff]   ;;  %v3270_v28 = vld [vmem:[#allocation5 + $0x4] ss:$16 sps:$4 sm:$0xff]  }
  0xb3   : > { %899 = vmatpush1.bf16.msra.mxu0 %v3244_v10  ;;  %940 = vmatpush1.bf16.msra.mxu1 %v3245_v11  ;;  %v3272_v29 = vld [vmem:[#allocation5 + $0xc] ss:$16 sps:$4 sm:$0xff]   ;;  %v3274_v30 = vld [vmem:[#allocation5] ss:$16 sps:$4 sm:$0xff]   ;;  %v3275_v31 = vld [vmem:[#allocation5 + $0x8] ss:$16 sps:$4 sm:$0xff]  }
  0xb4   : > { %900 = vmatprep.subr.bf16.mxu0 %v3246_v12  ;;  %941 = vmatprep.subr.bf16.mxu1 %v3248_v13  ;;  %v3276_v32 = vld [vmem:[#allocation5 + $0x1e4] ss:$16 sps:$4 sm:$0xff]   ;;  %v3278_v33 = vld [vmem:[#allocation5 + $0x1ec] ss:$16 sps:$4 sm:$0xff]   ;;  %v3280_v34 = vld [vmem:[#allocation5 + $0x1e0] ss:$16 sps:$4 sm:$0xff]  }
  0xb5   : > { %v3281_v35 = vld [vmem:[#allocation5 + $0x1e8] ss:$16 sps:$4 sm:$0xff]   ;;  %v3282_v36 = vld [vmem:[#allocation5 + $0x1c4] ss:$16 sps:$4 sm:$0xff]   ;;  %v3284_v37 = vld [vmem:[#allocation5 + $0x1cc] ss:$16 sps:$4 sm:$0xff]  }
  0xb6   : > { %v3286_v38 = vld [vmem:[#allocation5 + $0x1c0] ss:$16 sps:$4 sm:$0xff]   ;;  %v3287_v39 = vld [vmem:[#allocation5 + $0x1c8] ss:$16 sps:$4 sm:$0xff]   ;;  %v3288_v40 = vld [vmem:[#allocation5 + $0x1a4] ss:$16 sps:$4 sm:$0xff]  }
  0xb7   : > { %901 = vmatpush1.bf16.msra.mxu0 %v3250_v14  ;;  %942 = vmatpush1.bf16.msra.mxu1 %v3251_v15  ;;  %v3290_v41 = vld [vmem:[#allocation5 + $0x1ac] ss:$16 sps:$4 sm:$0xff]   ;;  %v3292_v42 = vld [vmem:[#allocation5 + $0x1a0] ss:$16 sps:$4 sm:$0xff]   ;;  %v3293_v43 = vld [vmem:[#allocation5 + $0x1a8] ss:$16 sps:$4 sm:$0xff]  }
  0xb8   : > { %902 = vmatprep.subr.bf16.mxu0 %v3252_v16  ;;  %943 = vmatprep.subr.bf16.mxu1 %v3254_v17  ;;  %v3294_v44 = vld [vmem:[#allocation5 + $0x184] ss:$16 sps:$4 sm:$0xff]   ;;  %v3296_v45 = vld [vmem:[#allocation5 + $0x18c] ss:$16 sps:$4 sm:$0xff]   ;;  %v3298_v47 = vld [vmem:[#allocation5 + $0x180] ss:$16 sps:$4 sm:$0xff]  }
  0xb9   : > { %v480_v46 = vld [vmem:[%s408_s24] sm:$0xff]  ;;  %s3019_s28 = sshll.u32 %s3919_s19, 7  ;;  %s478_s15 = scalar_lea.vmem [#allocation14], %s4083_s12 }
  0xba   : > { %v2762_v48 = vcombine.high %v480_v46, %v480_v46  ;;  %v3299_v49 = vld [vmem:[#allocation5 + $0x188] ss:$16 sps:$4 sm:$0xff]   ;;  %v3300_v50 = vld [vmem:[#allocation5 + $0x164] ss:$16 sps:$4 sm:$0xff]   ;;  %v3302_v51 = vld [vmem:[#allocation5 + $0x16c] ss:$16 sps:$4 sm:$0xff]   ;;  %v2761_v4 = vcombine.low %v480_v46, %v480_v46 }
  0xbb   : > { %903 = vmatpush1.bf16.msra.mxu0 %v3256_v18  ;;  %944 = vmatpush1.bf16.msra.mxu1 %v3257_v19  ;;  %v3304_v52 = vld [vmem:[#allocation5 + $0x160] ss:$16 sps:$4 sm:$0xff]   ;;  %v3305_v53 = vld [vmem:[#allocation5 + $0x168] ss:$16 sps:$4 sm:$0xff]   ;;  %v3306_v54 = vld [vmem:[#allocation5 + $0x144] ss:$16 sps:$4 sm:$0xff]  }
  0xbc   : > { %904 = vmatprep.subr.bf16.mxu0 %v3258_v20  ;;  %945 = vmatprep.subr.bf16.mxu1 %v3260_v21  ;;  %v3308_v55 = vld [vmem:[#allocation5 + $0x14c] ss:$16 sps:$4 sm:$0xff]   ;;  %v3310_v56 = vld [vmem:[#allocation5 + $0x140] ss:$16 sps:$4 sm:$0xff]   ;;  %v3311_v57 = vld [vmem:[#allocation5 + $0x148] ss:$16 sps:$4 sm:$0xff]  }
  0xbd   : > { %926 = vmatprep.mubr.bf16.mxu0 %v2762_v48  ;;  %967 = vmatprep.mubr.bf16.mxu1 %v2762_v48  ;;  %v3312_v58 = vld [vmem:[#allocation5 + $0x124] ss:$16 sps:$4 sm:$0xff]   ;;  %v3314_v59 = vld [vmem:[#allocation5 + $0x12c] ss:$16 sps:$4 sm:$0xff]   ;;  %v3316_v60 = vld [vmem:[#allocation5 + $0x120] ss:$16 sps:$4 sm:$0xff]  }
  0xbe   : > { %v3317_v61 = vld [vmem:[#allocation5 + $0x128] ss:$16 sps:$4 sm:$0xff]   ;;  %v3318_v62 = vld [vmem:[#allocation5 + $0x104] ss:$16 sps:$4 sm:$0xff]   ;;  %v3320_v63 = vld [vmem:[#allocation5 + $0x10c] ss:$16 sps:$4 sm:$0xff]  }
  0xbf   : > { %905 = vmatpush1.bf16.msra.mxu0 %v3262_v22  ;;  %946 = vmatpush1.bf16.msra.mxu1 %v3263_v23  ;;  %v3322_v0 = vld [vmem:[#allocation5 + $0x100] ss:$16 sps:$4 sm:$0xff]   ;;  %v3323_v1 = vld [vmem:[#allocation5 + $0x108] ss:$16 sps:$4 sm:$0xff]   ;;  %v3326_v5 = vld [vmem:[#allocation8 + $0xe0] ss:$16 sps:$4 sm:$0xff]  }
  0xc0   : > { %906 = vmatprep.subr.bf16.mxu0 %v3264_v24  ;;  %947 = vmatprep.subr.bf16.mxu1 %v3266_v25  ;;  %v3328_v2 = vld [vmem:[#allocation8 + $0xe4] ss:$16 sps:$4 sm:$0xff]   ;;  %v3329_v6 = vld [vmem:[#allocation8 + $0x2e0] ss:$16 sps:$4 sm:$0xff]   ;;  %s2601_s26 = sshll.u32 %s478_s15, 4  ;;  %s4313_s11 = sld [smem:[#allocation29_spill]]  ;;  %s2602_s26 = int_to_ptr.vmem [resolvable:$true] %s2601_s26 }
  0xc1   : > { %v3331_v3 = vld [vmem:[#allocation8 + $0x2e4] ss:$16 sps:$4 sm:$0xff]   ;;  %v3332_v9 = vld [vmem:[#allocation8 + $0xc0] ss:$16 sps:$4 sm:$0xff]   ;;  %s2588_s16 = scalar_lea.sflag [#allocation4], %s406_s25  ;;  %s3746_s29 = scalar_lea.vmem %s2602_s26, 128 }
  0xc2   : > { %v3334_v7 = vld [vmem:[#allocation8 + $0xc4] ss:$16 sps:$4 sm:$0xff]   ;;  %v3335_v10 = vld [vmem:[#allocation8 + $0x2c0] ss:$16 sps:$4 sm:$0xff]   ;;  %p3747_p9 = scmp.ne.s32.totalorder %s2602_s26, %s3746_s29  ;;  %p4314_p6 = scmp.ne.s32.totalorder %s4296_s27, 0 }
  0xc3   : > { %907 = vmatpush1.bf16.msra.mxu0 %v3268_v26  ;;  %948 = vmatpush1.bf16.msra.mxu1 %v3269_v27  ;;  %v3337_v8 = vld [vmem:[#allocation8 + $0x2c4] ss:$16 sps:$4 sm:$0xff]   ;;  %v3338_v13 = vld [vmem:[#allocation8 + $0xa0] ss:$16 sps:$4 sm:$0xff]   ;;  %s3842_s17 = smov [#allocation14]  }
  0xc4   : > { %908 = vmatprep.subr.bf16.mxu0 %v3270_v28  ;;  %949 = vmatprep.subr.bf16.mxu1 %v3272_v29  ;;  %v3340_v11 = vld [vmem:[#allocation8 + $0xa4] ss:$16 sps:$4 sm:$0xff]   ;;  %v3341_v14 = vld [vmem:[#allocation8 + $0x2a0] ss:$16 sps:$4 sm:$0xff]   ;;  %p3748_p4 = pnand %p3747_p9, %p4314_p6  ;;  %s3750_s24 = sshll.u32 %s3842_s17, 4  ;;  %s3751_s24 = int_to_ptr.vmem [resolvable:$false] %s3750_s24 }
  0xc5   : > { %v3343_v12 = vld [vmem:[#allocation8 + $0x2a4] ss:$16 sps:$4 sm:$0xff]   ;;  %v3344_v17 = vld [vmem:[#allocation8 + $0x80] ss:$16 sps:$4 sm:$0xff]   ;;  %s3752_s19 = scalar_lea.vmem %s3751_s24, 256  ;;  %p3753_p11 = scmp.lt.s32.totalorder %s2602_s26, %s3751_s24 }
  0xc6   : > { %v3346_v15 = vld [vmem:[#allocation8 + $0x84] ss:$16 sps:$4 sm:$0xff]   ;;  %v3347_v18 = vld [vmem:[#allocation8 + $0x280] ss:$16 sps:$4 sm:$0xff]   ;;  %s2599_s10 = scalar_lea.hbm %s4313_s11, %s3019_s28  ;;  %p3749_p10 = pneg %p3748_p4 }
  0xc7   : > { %909 = vmatpush1.bf16.msra.mxu0 %v3274_v30  ;;  %950 = vmatpush1.bf16.msra.mxu1 %v3275_v31  ;;  %v3349_v16 = vld [vmem:[#allocation8 + $0x284] ss:$16 sps:$4 sm:$0xff]   ;;  %v3350_v21 = vld [vmem:[#allocation8 + $0x60] ss:$16 sps:$4 sm:$0xff]   ;;  %p3754_p13 = scmp.lt.s32.totalorder %s3752_s19, %s3746_s29 }
  0xc8   : > { %910 = vmatprep.subr.bf16.mxu0 %v3276_v32  ;;  %951 = vmatprep.subr.bf16.mxu1 %v3278_v33  ;;  %v3352_v19 = vld [vmem:[#allocation8 + $0x64] ss:$16 sps:$4 sm:$0xff]   ;;  %v3353_v22 = vld [vmem:[#allocation8 + $0x260] ss:$16 sps:$4 sm:$0xff]  }
  0xc9   : > { %v3355_v20 = vld [vmem:[#allocation8 + $0x264] ss:$16 sps:$4 sm:$0xff]   ;;  %v3356_v25 = vld [vmem:[#allocation8 + $0x40] ss:$16 sps:$4 sm:$0xff]   ;;  %p3755_p2 = por %p3754_p13, %p3753_p11 }
  0xca   : > { %v3358_v23 = vld [vmem:[#allocation8 + $0x44] ss:$16 sps:$4 sm:$0xff]   ;;  %v3359_v26 = vld [vmem:[#allocation8 + $0x240] ss:$16 sps:$4 sm:$0xff]  }
  0xcb   : > { %911 = vmatpush2.bf16.msra.mxu0 %v3280_v34  ;;  %952 = vmatpush2.bf16.msra.mxu1 %v3281_v35  ;;  %v3361_v24 = vld [vmem:[#allocation8 + $0x244] ss:$16 sps:$4 sm:$0xff]   ;;  %v3362_v29 = vld [vmem:[#allocation8 + $0x20] ss:$16 sps:$4 sm:$0xff]   ;;  %p3756_p1 = pnand %p3755_p2, %p3749_p10 }
  0xcc   : > { %912 = vmatprep.subr.bf16.mxu0 %v3282_v36  ;;  %953 = vmatprep.subr.bf16.mxu1 %v3284_v37  ;;  %v3364_v27 = vld [vmem:[#allocation8 + $0x24] ss:$16 sps:$4 sm:$0xff]   ;;  %v3365_v30 = vld [vmem:[#allocation8 + $0x220] ss:$16 sps:$4 sm:$0xff]  }
  0xcd   : > { %v3367_v28 = vld [vmem:[#allocation8 + $0x224] ss:$16 sps:$4 sm:$0xff]   ;;  %v3368_v33 = vld [vmem:[#allocation8] ss:$16 sps:$4 sm:$0xff]  }
  0xce   : > { %v3370_v31 = vld [vmem:[#allocation8 + $0x4] ss:$16 sps:$4 sm:$0xff]   ;;  %v3371_v34 = vld [vmem:[#allocation8 + $0x200] ss:$16 sps:$4 sm:$0xff]  }
  0xcf   : > { %913 = vmatpush2.bf16.msra.mxu0 %v3286_v38  ;;  %954 = vmatpush2.bf16.msra.mxu1 %v3287_v39  ;;  %v3373_v32 = vld [vmem:[#allocation8 + $0x204] ss:$16 sps:$4 sm:$0xff]   ;;  %v3374_v37 = vld [vmem:[#allocation8 + $0x1e0] ss:$16 sps:$4 sm:$0xff]  }
  0xd0   : > { %914 = vmatprep.subr.bf16.mxu0 %v3288_v40  ;;  %955 = vmatprep.subr.bf16.mxu1 %v3290_v41  ;;  %v3376_v35 = vld [vmem:[#allocation8 + $0x1e4] ss:$16 sps:$4 sm:$0xff]   ;;  %v3377_v38 = vld [vmem:[#allocation8 + $0x3e0] ss:$16 sps:$4 sm:$0xff]  }
  0xd1   : > { %v3379_v36 = vld [vmem:[#allocation8 + $0x3e4] ss:$16 sps:$4 sm:$0xff]   ;;  %v3380_v41 = vld [vmem:[#allocation8 + $0x1c0] ss:$16 sps:$4 sm:$0xff]  }
  0xd2   : > { %v3382_v39 = vld [vmem:[#allocation8 + $0x1c4] ss:$16 sps:$4 sm:$0xff]   ;;  %v3389_v46 = vld [vmem:[#allocation8 + $0x3a0] ss:$16 sps:$4 sm:$0xff]  }
  0xd3   : > { %915 = vmatpush2.bf16.msra.mxu0 %v3292_v42  ;;  %956 = vmatpush2.bf16.msra.mxu1 %v3293_v43  ;;  %v3385_v40 = vld [vmem:[#allocation8 + $0x3c4] ss:$16 sps:$4 sm:$0xff]   ;;  %v3383_v42 = vld [vmem:[#allocation8 + $0x3c0] ss:$16 sps:$4 sm:$0xff]  }
  0xd4   : > { %916 = vmatprep.subr.bf16.mxu0 %v3294_v44  ;;  %957 = vmatprep.subr.bf16.mxu1 %v3296_v45  ;;  %v3388_v43 = vld [vmem:[#allocation8 + $0x1a4] ss:$16 sps:$4 sm:$0xff]   ;;  %v3386_v45 = vld [vmem:[#allocation8 + $0x1a0] ss:$16 sps:$4 sm:$0xff]  }
  0xd5   : > { %v3391_v44 = vld [vmem:[#allocation8 + $0x3a4] ss:$16 sps:$4 sm:$0xff]  }
  0xd6   : > { %v3397_v48 = vld [vmem:[#allocation8 + $0x384] ss:$16 sps:$4 sm:$0xff]  }
  0xd7   : > { %917 = vmatpush2.bf16.msra.mxu0 %v3298_v47  ;;  %958 = vmatpush2.bf16.msra.mxu1 %v3299_v49  ;;  %v3394_v47 = vld [vmem:[#allocation8 + $0x184] ss:$16 sps:$4 sm:$0xff]   ;;  %v3392_v49 = vld [vmem:[#allocation8 + $0x180] ss:$16 sps:$4 sm:$0xff]  }
  0xd8   : > { %918 = vmatprep.subr.bf16.mxu0 %v3300_v50  ;;  %959 = vmatprep.subr.bf16.mxu1 %v3302_v51  ;;  %v3395_v50 = vld [vmem:[#allocation8 + $0x380] ss:$16 sps:$4 sm:$0xff]   ;;  %v3400_v51 = vld [vmem:[#allocation8 + $0x164] ss:$16 sps:$4 sm:$0xff]  }
  0xdb   : > { %919 = vmatpush2.bf16.msra.mxu0 %v3304_v52  ;;  %960 = vmatpush2.bf16.msra.mxu1 %v3305_v53  ;;  %v3403_v52 = vld [vmem:[#allocation8 + $0x364] ss:$16 sps:$4 sm:$0xff]   ;;  %v3398_v53 = vld [vmem:[#allocation8 + $0x160] ss:$16 sps:$4 sm:$0xff]  }
  0xdc   : > { %920 = vmatprep.subr.bf16.mxu0 %v3306_v54  ;;  %961 = vmatprep.subr.bf16.mxu1 %v3308_v55  ;;  %v3401_v54 = vld [vmem:[#allocation8 + $0x360] ss:$16 sps:$4 sm:$0xff]   ;;  %v3406_v55 = vld [vmem:[#allocation8 + $0x144] ss:$16 sps:$4 sm:$0xff]  }
  0xdf   : > { %921 = vmatpush2.bf16.msra.mxu0 %v3310_v56  ;;  %962 = vmatpush2.bf16.msra.mxu1 %v3311_v57  ;;  %v3409_v56 = vld [vmem:[#allocation8 + $0x344] ss:$16 sps:$4 sm:$0xff]   ;;  %v3404_v57 = vld [vmem:[#allocation8 + $0x140] ss:$16 sps:$4 sm:$0xff]  }
  0xe0   : > { %922 = vmatprep.subr.bf16.mxu0 %v3312_v58  ;;  %963 = vmatprep.subr.bf16.mxu1 %v3314_v59  ;;  %v3407_v58 = vld [vmem:[#allocation8 + $0x340] ss:$16 sps:$4 sm:$0xff]   ;;  %v3412_v59 = vld [vmem:[#allocation8 + $0x124] ss:$16 sps:$4 sm:$0xff]  }
  0xe3   : > { %923 = vmatpush2.bf16.msra.mxu0 %v3316_v60  ;;  %964 = vmatpush2.bf16.msra.mxu1 %v3317_v61  ;;  %v3415_v60 = vld [vmem:[#allocation8 + $0x324] ss:$16 sps:$4 sm:$0xff]   ;;  %v3410_v61 = vld [vmem:[#allocation8 + $0x120] ss:$16 sps:$4 sm:$0xff]  }
  0xe4   : > { %924 = vmatprep.subr.bf16.mxu0 %v3318_v62  ;;  %965 = vmatprep.subr.bf16.mxu1 %v3320_v63  ;;  %v3413_v62 = vld [vmem:[#allocation8 + $0x320] ss:$16 sps:$4 sm:$0xff]   ;;  %v3418_v63 = vld [vmem:[#allocation8 + $0x104] ss:$16 sps:$4 sm:$0xff]  }
  0xe7   : > { %925 = vmatpush2.bf16.msra.mxu0 %v3322_v0  ;;  %966 = vmatpush2.bf16.msra.mxu1 %v3323_v1  ;;  %v3421_v0 = vld [vmem:[#allocation8 + $0x304] ss:$16 sps:$4 sm:$0xff]   ;;  %v3416_v1 = vld [vmem:[#allocation8 + $0x100] ss:$16 sps:$4 sm:$0xff]  }
  0xe8   : > { %1778 = vmatprep.subr.bf16.mxu0 %v3328_v2  ;;  %1819 = vmatprep.subr.bf16.mxu1 %v3331_v3  ;;  %v3419_v2 = vld [vmem:[#allocation8 + $0x300] ss:$16 sps:$4 sm:$0xff]   ;;  %v3424_v3 = vld [vmem:[#allocation8 + $0xec] ss:$16 sps:$4 sm:$0xff]  }
  0xea   : > { %927 = vmatmul.mubr.bf16.vlgmr.msra.gmra.mxu0 %v2761_v4  ;;  %968 = vmatmul.mubr.bf16.vlgmr.msra.gmra.mxu1 %v2761_v4  ;;  %v3427_v4 = vld [vmem:[#allocation8 + $0x2ec] ss:$16 sps:$4 sm:$0xff]  }
  0xeb   : > { %1779 = vmatpush1.bf16.msra.mxu0 %v3326_v5  ;;  %1820 = vmatpush1.bf16.msra.mxu1 %v3329_v6  ;;  %v547_v5 = vlaneseq }
  0xec   : > { %1780 = vmatprep.subr.bf16.mxu0 %v3334_v7  ;;  %1821 = vmatprep.subr.bf16.mxu1 %v3337_v8 }
  0xed   : > { %v4110_v6 = vshrl.u32 %v547_v5, 7 }
  0xef   : > { %1781 = vmatpush1.bf16.msra.mxu0 %v3332_v9  ;;  %1822 = vmatpush1.bf16.msra.mxu1 %v3335_v10  ;;  %v4113_v7 = vsub.s32 0, %v4110_v6  ;;  %v4116_v8 = vsub.s32 2, %v4110_v6  ;;  %v545_v9 = vld [vmem:[#allocation7] sm:$0xf]  ;;  %v4119_v10 = vsub.s32 1, %v4110_v6 }
  0xf0   : > { %1782 = vmatprep.subr.bf16.mxu0 %v3340_v11  ;;  %1823 = vmatprep.subr.bf16.mxu1 %v3343_v12  ;;  %v4122_v11 = vsub.s32 3, %v4110_v6 }
  0xf1   : > { %v550_v12 = vrot.slane %v545_v9, %v4113_v7 }
  0xf3   : > { %1783 = vmatpush1.bf16.msra.mxu0 %v3338_v13  ;;  %1824 = vmatpush1.bf16.msra.mxu1 %v3341_v14  ;;  %v558_v13 = vrot.slane %v545_v9, %v4116_v8  ;;  %v554_v14 = vrot.slane %v545_v9, %v4119_v10 }
  0xf4   : > { %1784 = vmatprep.subr.bf16.mxu0 %v3346_v15  ;;  %1825 = vmatprep.subr.bf16.mxu1 %v3349_v16  ;;  %v562_v15 = vrot.slane %v545_v9, %v4122_v11  ;;  %v3467_v9 = vld [vmem:[#allocation8 + $0x208] ss:$16 sps:$4 sm:$0xff]  }
  0xf7   : > { %1785 = vmatpush1.bf16.msra.mxu0 %v3344_v17  ;;  %1826 = vmatpush1.bf16.msra.mxu1 %v3347_v18 }
  0xf8   : > { %1786 = vmatprep.subr.bf16.mxu0 %v3352_v19  ;;  %1827 = vmatprep.subr.bf16.mxu1 %v3355_v20 }
  0xfb   : > { %1787 = vmatpush1.bf16.msra.mxu0 %v3350_v21  ;;  %1828 = vmatpush1.bf16.msra.mxu1 %v3353_v22 }
  0xfc   : > { %1788 = vmatprep.subr.bf16.mxu0 %v3358_v23  ;;  %1829 = vmatprep.subr.bf16.mxu1 %v3361_v24 }
  0xff   : > { %1789 = vmatpush1.bf16.msra.mxu0 %v3356_v25  ;;  %1830 = vmatpush1.bf16.msra.mxu1 %v3359_v26 }
 0x100   : > { %1790 = vmatprep.subr.bf16.mxu0 %v3364_v27  ;;  %1831 = vmatprep.subr.bf16.mxu1 %v3367_v28 }
 0x103   : > { %1791 = vmatpush1.bf16.msra.mxu0 %v3362_v29  ;;  %1832 = vmatpush1.bf16.msra.mxu1 %v3365_v30 }
 0x104   : > { %1792 = vmatprep.subr.bf16.mxu0 %v3370_v31  ;;  %1833 = vmatprep.subr.bf16.mxu1 %v3373_v32 }
 0x107   : > { %1793 = vmatpush1.bf16.msra.mxu0 %v3368_v33  ;;  %1834 = vmatpush1.bf16.msra.mxu1 %v3371_v34 }
 0x108   : > { %1794 = vmatprep.subr.bf16.mxu0 %v3376_v35  ;;  %1835 = vmatprep.subr.bf16.mxu1 %v3379_v36 }
 0x10b   : > { %1795 = vmatpush2.bf16.msra.mxu0 %v3374_v37  ;;  %1836 = vmatpush2.bf16.msra.mxu1 %v3377_v38  ;;  %v3422_v38 = vld [vmem:[#allocation8 + $0xe8] ss:$16 sps:$4 sm:$0xff]  }
 0x10c   : > { %1796 = vmatprep.subr.bf16.mxu0 %v3382_v39  ;;  %1837 = vmatprep.subr.bf16.mxu1 %v3385_v40  ;;  %v3425_v39 = vld [vmem:[#allocation8 + $0x2e8] ss:$16 sps:$4 sm:$0xff]  }
 0x10f   : > { %1797 = vmatpush2.bf16.msra.mxu0 %v3380_v41  ;;  %1838 = vmatpush2.bf16.msra.mxu1 %v3383_v42  ;;  %v3430_v42 = vld [vmem:[#allocation8 + $0xcc] ss:$16 sps:$4 sm:$0xff]  }
 0x110   : > { %1798 = vmatprep.subr.bf16.mxu0 %v3388_v43  ;;  %1839 = vmatprep.subr.bf16.mxu1 %v3391_v44  ;;  %v3433_v43 = vld [vmem:[#allocation8 + $0x2cc] ss:$16 sps:$4 sm:$0xff]   ;;  %v3428_v44 = vld [vmem:[#allocation8 + $0xc8] ss:$16 sps:$4 sm:$0xff]  }
 0x113   : > { %1799 = vmatpush2.bf16.msra.mxu0 %v3386_v45  ;;  %1840 = vmatpush2.bf16.msra.mxu1 %v3389_v46  ;;  %v3431_v45 = vld [vmem:[#allocation8 + $0x2c8] ss:$16 sps:$4 sm:$0xff]   ;;  %v3436_v46 = vld [vmem:[#allocation8 + $0xac] ss:$16 sps:$4 sm:$0xff]  }
 0x114   : > { %1800 = vmatprep.subr.bf16.mxu0 %v3394_v47  ;;  %1841 = vmatprep.subr.bf16.mxu1 %v3397_v48  ;;  %v3439_v47 = vld [vmem:[#allocation8 + $0x2ac] ss:$16 sps:$4 sm:$0xff]   ;;  %v3434_v48 = vld [vmem:[#allocation8 + $0xa8] ss:$16 sps:$4 sm:$0xff]  }
 0x117   : > { %1801 = vmatpush2.bf16.msra.mxu0 %v3392_v49  ;;  %1842 = vmatpush2.bf16.msra.mxu1 %v3395_v50  ;;  %v3437_v49 = vld [vmem:[#allocation8 + $0x2a8] ss:$16 sps:$4 sm:$0xff]   ;;  %v3442_v50 = vld [vmem:[#allocation8 + $0x8c] ss:$16 sps:$4 sm:$0xff]  }
 0x118   : > { %1802 = vmatprep.subr.bf16.mxu0 %v3400_v51  ;;  %1843 = vmatprep.subr.bf16.mxu1 %v3403_v52  ;;  %v3445_v51 = vld [vmem:[#allocation8 + $0x28c] ss:$16 sps:$4 sm:$0xff]   ;;  %v3440_v52 = vld [vmem:[#allocation8 + $0x88] ss:$16 sps:$4 sm:$0xff]  }
 0x11b   : > { %1803 = vmatpush2.bf16.msra.mxu0 %v3398_v53  ;;  %1844 = vmatpush2.bf16.msra.mxu1 %v3401_v54  ;;  %v3443_v53 = vld [vmem:[#allocation8 + $0x288] ss:$16 sps:$4 sm:$0xff]   ;;  %v3448_v54 = vld [vmem:[#allocation8 + $0x6c] ss:$16 sps:$4 sm:$0xff]  }
 0x11c   : > { %1804 = vmatprep.subr.bf16.mxu0 %v3406_v55  ;;  %1845 = vmatprep.subr.bf16.mxu1 %v3409_v56  ;;  %v3451_v55 = vld [vmem:[#allocation8 + $0x26c] ss:$16 sps:$4 sm:$0xff]   ;;  %v3446_v56 = vld [vmem:[#allocation8 + $0x68] ss:$16 sps:$4 sm:$0xff]  }
 0x11f   : > { %1805 = vmatpush2.bf16.msra.mxu0 %v3404_v57  ;;  %1846 = vmatpush2.bf16.msra.mxu1 %v3407_v58  ;;  %v3449_v57 = vld [vmem:[#allocation8 + $0x268] ss:$16 sps:$4 sm:$0xff]   ;;  %v3454_v58 = vld [vmem:[#allocation8 + $0x4c] ss:$16 sps:$4 sm:$0xff]  }
 0x120   : > { %1806 = vmatprep.subr.bf16.mxu0 %v3412_v59  ;;  %1847 = vmatprep.subr.bf16.mxu1 %v3415_v60  ;;  %v3457_v59 = vld [vmem:[#allocation8 + $0x24c] ss:$16 sps:$4 sm:$0xff]   ;;  %v3452_v60 = vld [vmem:[#allocation8 + $0x48] ss:$16 sps:$4 sm:$0xff]  }
 0x123   : > { %1807 = vmatpush2.bf16.msra.mxu0 %v3410_v61  ;;  %1848 = vmatpush2.bf16.msra.mxu1 %v3413_v62  ;;  %v3455_v61 = vld [vmem:[#allocation8 + $0x248] ss:$16 sps:$4 sm:$0xff]   ;;  %v3460_v62 = vld [vmem:[#allocation8 + $0x2c] ss:$16 sps:$4 sm:$0xff]  }
 0x124   : > { %1808 = vmatprep.subr.bf16.mxu0 %v3418_v63  ;;  %1849 = vmatprep.subr.bf16.mxu1 %v3421_v0  ;;  %v3463_v63 = vld [vmem:[#allocation8 + $0x22c] ss:$16 sps:$4 sm:$0xff]   ;;  %v3458_v0 = vld [vmem:[#allocation8 + $0x28] ss:$16 sps:$4 sm:$0xff]  }
 0x127   : > { %1809 = vmatpush2.bf16.msra.mxu0 %v3416_v1  ;;  %1850 = vmatpush2.bf16.msra.mxu1 %v3419_v2  ;;  %v3461_v1 = vld [vmem:[#allocation8 + $0x228] ss:$16 sps:$4 sm:$0xff]   ;;  %v3466_v2 = vld [vmem:[#allocation8 + $0xc] ss:$16 sps:$4 sm:$0xff]  }
 0x128   : > { %1860 = vmatprep.subr.bf16.mxu0 %v3424_v3  ;;  %1901 = vmatprep.subr.bf16.mxu1 %v3427_v4  ;;  %v3469_v3 = vld [vmem:[#allocation8 + $0x20c] ss:$16 sps:$4 sm:$0xff]   ;;  %v3464_v4 = vld [vmem:[#allocation8 + $0x8] ss:$16 sps:$4 sm:$0xff]  }
 0x1aa   : > { %v928_v16 = vpop.f32.mrf.mxu0  ;;  %v969_v17 = vpop.f32.mrf.mxu1 }
 0x1ab   : > { %v929_v18 = vadd.f32 %v928_v16, %v550_v12  ;;  %v970_v19 = vadd.f32 %v969_v17, %v558_v13  ;;  %v3472_v12 = vld [vmem:[#allocation8 + $0x1ec] ss:$16 sps:$4 sm:$0xff]  }
 0x1ac   : > { %v930_v20 = vpop.f32.mrf.mxu0  ;;  %v971_v21 = vpop.f32.mrf.mxu1  ;;  %v3475_v13 = vld [vmem:[#allocation8 + $0x3ec] ss:$16 sps:$4 sm:$0xff]  }
 0x1ad   : > { %v976_v22 = vmul.f32 0.2, %v929_v18  ;;  %v978_v23 = vmul.f32 0.2, %v970_v19  ;;  %v931_v24 = vadd.f32 %v930_v20, %v554_v14  ;;  %v972_v25 = vadd.f32 %v971_v21, %v562_v15  ;;  %v3470_v14 = vld [vmem:[#allocation8 + $0x1e8] ss:$16 sps:$4 sm:$0xff]  }
 0x1ae   : > { %v932_v26 = vpop.f32.mrf.mxu0  ;;  %v973_v27 = vpop.f32.mrf.mxu1  ;;  %v3473_v15 = vld [vmem:[#allocation8 + $0x3e8] ss:$16 sps:$4 sm:$0xff]   ;;  %v3478_v16 = vld [vmem:[#allocation8 + $0x1cc] ss:$16 sps:$4 sm:$0xff]  }
 0x1af   : > { %v977_v28 = vmul.f32 0.2, %v931_v24  ;;  %v979_v29 = vmul.f32 0.2, %v972_v25  ;;  %v980_v30 = vmax.f32 %v929_v18, %v976_v22  ;;  %v982_v31 = vmax.f32 %v970_v19, %v978_v23  ;;  %v3481_v17 = vld [vmem:[#allocation8 + $0x3cc] ss:$16 sps:$4 sm:$0xff]  }
 0x1b0   : > { %v933_v32 = vpop.f32.mrf.mxu0  ;;  %v974_v33 = vpop.f32.mrf.mxu1  ;;  %v3476_v18 = vld [vmem:[#allocation8 + $0x1c8] ss:$16 sps:$4 sm:$0xff]   ;;  %v3484_v20 = vld [vmem:[#allocation8 + $0x1ac] ss:$16 sps:$4 sm:$0xff]  }
 0x1b1   : > { %v981_v34 = vmax.f32 %v931_v24, %v977_v28  ;;  %v983_v35 = vmax.f32 %v972_v25, %v979_v29  ;;  %v4128_v40 = vpack.c.bf16 %v980_v30, %v980_v30  ;;  %v4130_v41 = vpack.c.bf16 %v982_v31, %v982_v31  ;;  %v3479_v19 = vld [vmem:[#allocation8 + $0x3c8] ss:$16 sps:$4 sm:$0xff]   ;;  %v3487_v21 = vld [vmem:[#allocation8 + $0x3ac] ss:$16 sps:$4 sm:$0xff]  }
 0x1b2   : > { %v3482_v22 = vld [vmem:[#allocation8 + $0x1a8] ss:$16 sps:$4 sm:$0xff]   ;;  %v3490_v24 = vld [vmem:[#allocation8 + $0x18c] ss:$16 sps:$4 sm:$0xff]  }
 0x1b3   : > { %v985_v36 = vpack.c.bf16 %v981_v34, %v981_v34  ;;  %v987_v37 = vpack.c.bf16 %v983_v35, %v983_v35  ;;  %v3485_v23 = vld [vmem:[#allocation8 + $0x3a8] ss:$16 sps:$4 sm:$0xff]   ;;  %v3493_v25 = vld [vmem:[#allocation8 + $0x38c] ss:$16 sps:$4 sm:$0xff]  }
 0x1b4   : > { %v3488_v26 = vld [vmem:[#allocation8 + $0x188] ss:$16 sps:$4 sm:$0xff]   ;;  %v3496_v28 = vld [vmem:[#allocation8 + $0x16c] ss:$16 sps:$4 sm:$0xff]  }
 0x1b5   : > { %1810 = vmatprep.mubr.bf16.mxu0 %v985_v36  ;;  %1851 = vmatprep.mubr.bf16.mxu1 %v987_v37  ;;  %v3491_v27 = vld [vmem:[#allocation8 + $0x388] ss:$16 sps:$4 sm:$0xff]   ;;  %v3499_v29 = vld [vmem:[#allocation8 + $0x36c] ss:$16 sps:$4 sm:$0xff]  }
 0x1b6   : > { %1811 = vmatmul.mubr.bf16.vlgmr.msra.gmra.mxu0 %v4128_v40  ;;  %1852 = vmatmul.mubr.bf16.vlgmr.msra.gmra.mxu1 %v4130_v41  ;;  %v3494_v30 = vld [vmem:[#allocation8 + $0x168] ss:$16 sps:$4 sm:$0xff]   ;;  %v3502_v32 = vld [vmem:[#allocation8 + $0x14c] ss:$16 sps:$4 sm:$0xff]  }
 0x1b7   : > { %1861 = vmatpush1.bf16.msra.mxu0 %v3422_v38  ;;  %1902 = vmatpush1.bf16.msra.mxu1 %v3425_v39  ;;  %v3497_v31 = vld [vmem:[#allocation8 + $0x368] ss:$16 sps:$4 sm:$0xff]   ;;  %v3505_v33 = vld [vmem:[#allocation8 + $0x34c] ss:$16 sps:$4 sm:$0xff]  }
 0x1b8   : > { %1892 = vmatprep.mubr.bf16.mxu0 %v985_v36  ;;  %1933 = vmatprep.mubr.bf16.mxu1 %v987_v37  ;;  %v3500_v34 = vld [vmem:[#allocation8 + $0x148] ss:$16 sps:$4 sm:$0xff]   ;;  %v3508_v36 = vld [vmem:[#allocation8 + $0x12c] ss:$16 sps:$4 sm:$0xff]  }
 0x1b9   : > { %1862 = vmatprep.subr.bf16.mxu0 %v3430_v42  ;;  %1903 = vmatprep.subr.bf16.mxu1 %v3433_v43  ;;  %v3503_v35 = vld [vmem:[#allocation8 + $0x348] ss:$16 sps:$4 sm:$0xff]   ;;  %v3511_v37 = vld [vmem:[#allocation8 + $0x32c] ss:$16 sps:$4 sm:$0xff]  }
 0x1ba   : > { %v3506_v38 = vld [vmem:[#allocation8 + $0x128] ss:$16 sps:$4 sm:$0xff]   ;;  %v3514_v42 = vld [vmem:[#allocation8 + $0x10c] ss:$16 sps:$4 sm:$0xff]  }
 0x1bb   : > { %1863 = vmatpush1.bf16.msra.mxu0 %v3428_v44  ;;  %1904 = vmatpush1.bf16.msra.mxu1 %v3431_v45  ;;  %v3509_v39 = vld [vmem:[#allocation8 + $0x328] ss:$16 sps:$4 sm:$0xff]   ;;  %v3517_v43 = vld [vmem:[#allocation8 + $0x30c] ss:$16 sps:$4 sm:$0xff]  }
 0x1bc   : > { %1864 = vmatprep.subr.bf16.mxu0 %v3436_v46  ;;  %1905 = vmatprep.subr.bf16.mxu1 %v3439_v47  ;;  %v3512_v44 = vld [vmem:[#allocation8 + $0x108] ss:$16 sps:$4 sm:$0xff]   ;;  %v3518_v46 = vld [vmem:[#allocation11 + $0x78] sm:$0xff]  }
 0x1bd   : > { %v3515_v45 = vld [vmem:[#allocation8 + $0x308] ss:$16 sps:$4 sm:$0xff]   ;;  %v3519_v47 = vld [vmem:[#allocation11 + $0x38] sm:$0xff]  }
 0x1bf   : > { %1865 = vmatpush1.bf16.msra.mxu0 %v3434_v48  ;;  %1906 = vmatpush1.bf16.msra.mxu1 %v3437_v49  ;;  %v3520_v48 = vld [vmem:[#allocation11 + $0x70] sm:$0xff]  }
 0x1c0   : > { %1866 = vmatprep.subr.bf16.mxu0 %v3442_v50  ;;  %1907 = vmatprep.subr.bf16.mxu1 %v3445_v51  ;;  %v3521_v49 = vld [vmem:[#allocation11 + $0x30] sm:$0xff]   ;;  %v3522_v50 = vld [vmem:[#allocation11 + $0x68] sm:$0xff]  }
 0x1c1   : > { %v3523_v51 = vld [vmem:[#allocation11 + $0x28] sm:$0xff]  }
 0x1c3   : > { %1867 = vmatpush1.bf16.msra.mxu0 %v3440_v52  ;;  %1908 = vmatpush1.bf16.msra.mxu1 %v3443_v53  ;;  %v3524_v52 = vld [vmem:[#allocation11 + $0x60] sm:$0xff]  }
 0x1c4   : > { %1868 = vmatprep.subr.bf16.mxu0 %v3448_v54  ;;  %1909 = vmatprep.subr.bf16.mxu1 %v3451_v55  ;;  %v3525_v53 = vld [vmem:[#allocation11 + $0x20] sm:$0xff]   ;;  %v3526_v54 = vld [vmem:[#allocation11 + $0x58] sm:$0xff]   ;;  %v3529_v55 = vld [vmem:[#allocation11 + $0x10] sm:$0xff]  }
 0x1c7   : > { %1869 = vmatpush1.bf16.msra.mxu0 %v3446_v56  ;;  %1910 = vmatpush1.bf16.msra.mxu1 %v3449_v57  ;;  %v3530_v56 = vld [vmem:[#allocation11 + $0x48] sm:$0xff]  }
 0x1c8   : > { %1870 = vmatprep.subr.bf16.mxu0 %v3454_v58  ;;  %1911 = vmatprep.subr.bf16.mxu1 %v3457_v59  ;;  %v3531_v57 = vld [vmem:[#allocation11 + $0x8] sm:$0xff]   ;;  %v3532_v58 = vld [vmem:[#allocation11 + $0x40] sm:$0xff]  }
 0x1c9   : > { %v3533_v59 = vld [vmem:[#allocation11] sm:$0xff]  }
 0x1cb   : > { %1871 = vmatpush1.bf16.msra.mxu0 %v3452_v60  ;;  %1912 = vmatpush1.bf16.msra.mxu1 %v3455_v61  ;;  %v3534_v60 = vld [vmem:[#allocation11 + $0xf8] sm:$0xff]  }
 0x1cc   : > { %1872 = vmatprep.subr.bf16.mxu0 %v3460_v62  ;;  %1913 = vmatprep.subr.bf16.mxu1 %v3463_v63  ;;  %v3535_v61 = vld [vmem:[#allocation11 + $0xb8] sm:$0xff]   ;;  %v3536_v62 = vld [vmem:[#allocation11 + $0xf0] sm:$0xff]  }
 0x1cd   : > { %v3537_v63 = vld [vmem:[#allocation11 + $0xb0] sm:$0xff]  }
 0x1cf   : > { %1873 = vmatpush1.bf16.msra.mxu0 %v3458_v0  ;;  %1914 = vmatpush1.bf16.msra.mxu1 %v3461_v1  ;;  %v3538_v0 = vld [vmem:[#allocation11 + $0xe8] sm:$0xff]  }
 0x1d0   : > { %1874 = vmatprep.subr.bf16.mxu0 %v3466_v2  ;;  %1915 = vmatprep.subr.bf16.mxu1 %v3469_v3  ;;  %v3539_v1 = vld [vmem:[#allocation11 + $0xa8] sm:$0xff]   ;;  %v3540_v2 = vld [vmem:[#allocation11 + $0xe0] sm:$0xff]  }
 0x1d1   : > { %v3541_v3 = vld [vmem:[#allocation11 + $0xa0] sm:$0xff]  }
 0x1d3   : > { %1875 = vmatpush1.bf16.msra.mxu0 %v3464_v4  ;;  %1916 = vmatpush1.bf16.msra.mxu1 %v3467_v9  ;;  %v3542_v4 = vld [vmem:[#allocation11 + $0xd8] sm:$0xff]  }
 0x1d4   : > { %1876 = vmatprep.subr.bf16.mxu0 %v3472_v12  ;;  %1917 = vmatprep.subr.bf16.mxu1 %v3475_v13  ;;  %v3543_v9 = vld [vmem:[#allocation11 + $0x98] sm:$0xff]   ;;  %v3544_v12 = vld [vmem:[#allocation11 + $0xd0] sm:$0xff]  }
 0x1d5   : > { %v3545_v13 = vld [vmem:[#allocation11 + $0x90] sm:$0xff]  }
 0x1d7   : > { %1877 = vmatpush2.bf16.msra.mxu0 %v3470_v14  ;;  %1918 = vmatpush2.bf16.msra.mxu1 %v3473_v15  ;;  %v4139_v14 = vld [vmem:[%s4255_s4] sm:$0xf] }
 0x1d8   : > { %1878 = vmatprep.subr.bf16.mxu0 %v3478_v16  ;;  %1919 = vmatprep.subr.bf16.mxu1 %v3481_v17  ;;  %v3546_v15 = vld [vmem:[#allocation11 + $0xc8] sm:$0xff]   ;;  %v3548_v17 = vld [vmem:[#allocation11 + $0xc0] sm:$0xff]  }
 0x1d9   : > { %v3547_v16 = vld [vmem:[#allocation11 + $0x88] sm:$0xff]  }
 0x1db   : > { %1879 = vmatpush2.bf16.msra.mxu0 %v3476_v18  ;;  %1920 = vmatpush2.bf16.msra.mxu1 %v3479_v19  ;;  %v1121_v18 = vrot.slane %v4139_v14, %v4113_v7  ;;  %v1125_v19 = vrot.slane %v4139_v14, %v4119_v10 }
 0x1dc   : > { %1880 = vmatprep.subr.bf16.mxu0 %v3484_v20  ;;  %1921 = vmatprep.subr.bf16.mxu1 %v3487_v21  ;;  %v3549_v20 = vld [vmem:[#allocation11 + $0x80] sm:$0xff]  }
 0x1df   : > { %1881 = vmatpush2.bf16.msra.mxu0 %v3482_v22  ;;  %1922 = vmatpush2.bf16.msra.mxu1 %v3485_v23 }
 0x1e0   : > { %1882 = vmatprep.subr.bf16.mxu0 %v3490_v24  ;;  %1923 = vmatprep.subr.bf16.mxu1 %v3493_v25 }
 0x1e3   : > { %1883 = vmatpush2.bf16.msra.mxu0 %v3488_v26  ;;  %1924 = vmatpush2.bf16.msra.mxu1 %v3491_v27 }
 0x1e4   : > { %1884 = vmatprep.subr.bf16.mxu0 %v3496_v28  ;;  %1925 = vmatprep.subr.bf16.mxu1 %v3499_v29 }
 0x1e7   : > { %1885 = vmatpush2.bf16.msra.mxu0 %v3494_v30  ;;  %1926 = vmatpush2.bf16.msra.mxu1 %v3497_v31 }
 0x1e8   : > { %1886 = vmatprep.subr.bf16.mxu0 %v3502_v32  ;;  %1927 = vmatprep.subr.bf16.mxu1 %v3505_v33 }
 0x1eb   : > { %1887 = vmatpush2.bf16.msra.mxu0 %v3500_v34  ;;  %1928 = vmatpush2.bf16.msra.mxu1 %v3503_v35 }
 0x1ec   : > { %1888 = vmatprep.subr.bf16.mxu0 %v3508_v36  ;;  %1929 = vmatprep.subr.bf16.mxu1 %v3511_v37 }
 0x1ef   : > { %1889 = vmatpush2.bf16.msra.mxu0 %v3506_v38  ;;  %1930 = vmatpush2.bf16.msra.mxu1 %v3509_v39 }
 0x1f0   : > { %1890 = vmatprep.subr.bf16.mxu0 %v3514_v42  ;;  %1931 = vmatprep.subr.bf16.mxu1 %v3517_v43 }
 0x1f3   : > { %1891 = vmatpush2.bf16.msra.mxu0 %v3512_v44  ;;  %1932 = vmatpush2.bf16.msra.mxu1 %v3515_v45 }
 0x1f4   : > { %3023 = vmatprep.subr.bf16.mxu0 %v3518_v46  ;;  %3045 = vmatprep.subr.bf16.mxu1 %v3534_v60 }
 0x1f6   : > { %1893 = vmatmul.mubr.bf16.vlgmr.msra.gmra.mxu0 %v4128_v40  ;;  %1934 = vmatmul.mubr.bf16.vlgmr.msra.gmra.mxu1 %v4130_v41  ;;  %v3527_v40 = vld [vmem:[#allocation11 + $0x18] sm:$0xff]   ;;  %v3528_v41 = vld [vmem:[#allocation11 + $0x50] sm:$0xff]  }
 0x1f7   : > { %3024 = vmatpush3.bf16.msra.mxu0 %v3519_v47  ;;  %3046 = vmatpush3.bf16.msra.mxu1 %v3535_v61 }
 0x1f8   : > { %3025 = vmatprep.subr.bf16.mxu0 %v3520_v48  ;;  %3047 = vmatprep.subr.bf16.mxu1 %v3536_v62 }
 0x1fb   : > { %3026 = vmatpush3.bf16.msra.mxu0 %v3521_v49  ;;  %3048 = vmatpush3.bf16.msra.mxu1 %v3537_v63 }
 0x1fc   : > { %3027 = vmatprep.subr.bf16.mxu0 %v3522_v50  ;;  %3049 = vmatprep.subr.bf16.mxu1 %v3538_v0 }
 0x1ff   : > { %3028 = vmatpush3.bf16.msra.mxu0 %v3523_v51  ;;  %3050 = vmatpush3.bf16.msra.mxu1 %v3539_v1 }
 0x200   : > { %3029 = vmatprep.subr.bf16.mxu0 %v3524_v52  ;;  %3051 = vmatprep.subr.bf16.mxu1 %v3540_v2 }
 0x203   : > { %3030 = vmatpush3.bf16.msra.mxu0 %v3525_v53  ;;  %3052 = vmatpush3.bf16.msra.mxu1 %v3541_v3  ;;  %v4148_v3 = vld [vmem:[%s4256_s5] sm:$0xf] }
 0x204   : > { %3031 = vmatprep.subr.bf16.mxu0 %v3526_v54  ;;  %3053 = vmatprep.subr.bf16.mxu1 %v3542_v4  ;;  %v2020_v4 = vrot.slane %v4148_v3, %v4113_v7 }
 0x207   : > { %3032 = vmatpush3.bf16.msra.mxu0 %v3527_v40  ;;  %3054 = vmatpush3.bf16.msra.mxu1 %v3543_v9  ;;  %v2024_v9 = vrot.slane %v4148_v3, %v4119_v10 }
 0x208   : > { %3033 = vmatprep.subr.bf16.mxu0 %v3528_v41  ;;  %3055 = vmatprep.subr.bf16.mxu1 %v3544_v12 }
 0x20b   : > { %3034 = vmatpush3.bf16.msra.mxu0 %v3529_v55  ;;  %3056 = vmatpush3.bf16.msra.mxu1 %v3545_v13  ;;  %v4154_v13 = vld [vmem:[#allocation10] sm:$0xf] }
 0x20c   : > { %3035 = vmatprep.subr.bf16.mxu0 %v3530_v56  ;;  %3057 = vmatprep.subr.bf16.mxu1 %v3546_v15 }
 0x20f   : > { %3036 = vmatpush3.bf16.msra.mxu0 %v3531_v57  ;;  %3058 = vmatpush3.bf16.msra.mxu1 %v3547_v16 }
 0x210   : > { %3037 = vmatprep.subr.bf16.mxu0 %v3532_v58  ;;  %3059 = vmatprep.subr.bf16.mxu1 %v3548_v17 }
 0x213   : > { %3038 = vmatpush3.bf16.msra.mxu0 %v3533_v59  ;;  %3060 = vmatpush3.bf16.msra.mxu1 %v3549_v20 }
 0x276   : > { %v1812_v21 = vpop.f32.mrf.mxu0  ;;  %v1853_v22 = vpop.f32.mrf.mxu1 }
 0x277   : > { %v1813_v23 = vadd.f32 %v1812_v21, %v1121_v18  ;;  %v2066_v18 = vrot.slane %v4154_v13, %v4113_v7 }
 0x278   : > { %v1814_v24 = vpop.f32.mrf.mxu0  ;;  %v1855_v25 = vpop.f32.mrf.mxu1 }
 0x279   : > { %v1854_v26 = vadd.f32 %v1853_v22, %v1813_v23  ;;  %v1815_v27 = vadd.f32 %v1814_v24, %v1125_v19  ;;  %v2070_v22 = vrot.slane %v4154_v13, %v4119_v10 }
 0x27a   : > { %v1816_v28 = vpop.f32.mrf.mxu0  ;;  %v1857_v29 = vpop.f32.mrf.mxu1 }
 0x27b   : > { %v1942_v30 = vrot.slane %v1854_v26, 4  ;;  %v1856_v31 = vadd.f32 %v1855_v25, %v1815_v27  ;;  %v1129_v25 = vrot.slane %v4139_v14, %v4116_v8  ;;  %v1133_v28 = vrot.slane %v4139_v14, %v4122_v11 }
 0x27c   : > { %v1817_v32 = vpop.f32.mrf.mxu0  ;;  %v1858_v33 = vpop.f32.mrf.mxu1 }
 0x27d   : > { %v1943_v34 = vadd.f32 %v1942_v30, %v1854_v26  ;;  %v1948_v35 = vrot.slane %v1856_v31, 4 }
 0x27f   : > { %v1944_v36 = vrot.slane %v1943_v34, 2  ;;  %v1949_v37 = vadd.f32 %v1948_v35, %v1856_v31 }
 0x281   : > { %v1945_v38 = vadd.f32 %v1944_v36, %v1943_v34  ;;  %v1950_v39 = vrot.slane %v1949_v37, 2 }
 0x283   : > { %v1946_v42 = vrot.slane %v1945_v38, 1  ;;  %v1951_v43 = vadd.f32 %v1950_v39, %v1949_v37 }
 0x285   : > { %v1947_v44 = vadd.f32 %v1946_v42, %v1945_v38  ;;  %v1952_v45 = vrot.slane %v1951_v43, 1 }
 0x287   : > { %v1967_v46 = vmul.f32 0.125, %v1947_v44  ;;  %v1953_v47 = vadd.f32 %v1952_v45, %v1951_v43 }
 0x289   : > { %v1971_v48 = vsub.f32 %v1854_v26, %v1967_v46  ;;  %v1968_v49 = vmul.f32 0.125, %v1953_v47 }
 0x28b   : > { %v1975_v50 = vmul.f32 %v1971_v48, %v1971_v48  ;;  %v1972_v51 = vsub.f32 %v1856_v31, %v1968_v49 }
 0x28d   : > { %v1979_v52 = vrot.slane %v1975_v50, 4  ;;  %v1976_v53 = vmul.f32 %v1972_v51, %v1972_v51 }
 0x28f   : > { %v1980_v54 = vadd.f32 %v1979_v52, %v1975_v50  ;;  %v1985_v40 = vrot.slane %v1976_v53, 4 }
 0x291   : > { %v1981_v41 = vrot.slane %v1980_v54, 2  ;;  %v1986_v55 = vadd.f32 %v1985_v40, %v1976_v53 }
 0x293   : > { %v1982_v56 = vadd.f32 %v1981_v41, %v1980_v54  ;;  %v1987_v57 = vrot.slane %v1986_v55, 2 }
 0x295   : > { %v1983_v58 = vrot.slane %v1982_v56, 1  ;;  %v1988_v59 = vadd.f32 %v1987_v57, %v1986_v55 }
 0x297   : > { %v1984_v60 = vadd.f32 %v1983_v58, %v1982_v56  ;;  %v1989_v61 = vrot.slane %v1988_v59, 1 }
 0x299   : > { %v2003_v62 = vmul.f32 0.125, %v1984_v60  ;;  %v1990_v63 = vadd.f32 %v1989_v61, %v1988_v59 }
 0x29b   : > { %v2007_v0 = vadd.f32 1e-05, %v2003_v62  ;;  %v2004_v1 = vmul.f32 0.125, %v1990_v63 }
 0x29d   : > { %3550 = vrsqrt.f32 %v2007_v0  ;;  %v2008_v2 = vadd.f32 1e-05, %v2004_v1 }
 0x29f   : > { %3552 = vrsqrt.f32 %v2008_v2 }
 0x2aa   : > { %v3551_v12 = vpop.eup %3550 }
 0x2ab   : > { %v2037_v15 = vmul.f32 %v3551_v12, %v2020_v4 }
 0x2ac   : > { %v3553_v16 = vpop.eup %3552 }
 0x2ad   : > { %v2044_v17 = vrot.slane %v2037_v15, %v4113_v7  ;;  %v2038_v19 = vmul.f32 %v3553_v16, %v2024_v9 }
 0x2af   : > { %v2057_v20 = vmul.f32 %v2044_v17, %v1971_v48  ;;  %v2048_v21 = vrot.slane %v2038_v19, %v4113_v7 }
 0x2b1   : > { %v2083_v23 = vadd.f32 %v2066_v18, %v2057_v20  ;;  %v2058_v24 = vmul.f32 %v2048_v21, %v1972_v51 }
 0x2b3   : > { %v2084_v26 = vadd.f32 %v2070_v22, %v2058_v24  ;;  %v2087_v27 = vmul.f32 0.2, %v2083_v23  ;;  %v2032_v24 = vrot.slane %v4148_v3, %v4122_v11 }
 0x2b5   : > { %v2088_v29 = vmul.f32 0.2, %v2084_v26  ;;  %v2091_v32 = vmax.f32 %v2083_v23, %v2087_v27  ;;  %v2028_v23 = vrot.slane %v4148_v3, %v4116_v8 }
 0x2b6   : > { %v1894_v30 = vpop.f32.mrf.mxu0  ;;  %v1935_v31 = vpop.f32.mrf.mxu1 }
 0x2b7   : > { %v1895_v33 = vadd.f32 %v1894_v30, %v1129_v25  ;;  %v2092_v34 = vmax.f32 %v2084_v26, %v2088_v29  ;;  %v2095_v43 = vpack.c.bf16 %v2091_v32, %v2091_v32  ;;  %v2074_v29 = vrot.slane %v4154_v13, %v4116_v8 }
 0x2b8   : > { %v1896_v35 = vpop.f32.mrf.mxu0  ;;  %v1937_v36 = vpop.f32.mrf.mxu1  ;;  %v2458_v8 = vadd.s32 120, %v4110_v6 }
 0x2b9   : > { %v1936_v37 = vadd.f32 %v1935_v31, %v1895_v33  ;;  %v1897_v10 = vadd.f32 %v1896_v35, %v1133_v28  ;;  %v2096_v38 = vpack.c.bf16 %v2092_v34, %v2092_v34  ;;  %v2078_v33 = vrot.slane %v4154_v13, %v4122_v11 }
 0x2ba   : > { %v1898_v39 = vpop.f32.mrf.mxu0  ;;  %v1939_v42 = vpop.f32.mrf.mxu1  ;;  %v2456_v13 = vadd.s32 104, %v4110_v6 }
 0x2bb   : > { %v1954_v44 = vrot.slane %v1936_v37, 4  ;;  %v1938_v45 = vadd.f32 %v1937_v36, %v1897_v10  ;;  %2394 = vmatprep.mubr.bf16.mxu0 %v2096_v38 }
 0x2bc   : > { %v1899_v46 = vpop.f32.mrf.mxu0  ;;  %v1940_v47 = vpop.f32.mrf.mxu1  ;;  %2395 = vmatmul.mubr.bf16.vlgmr.msra.gmra.mxu0 %v2095_v43  ;;  %v2460_v43 = vand.u32 127, %v547_v5  ;;  %v2453_v5 = vadd.s32 80, %v4110_v6 }
 0x2bd   : > { %v1955_v14 = vadd.f32 %v1954_v44, %v1936_v37  ;;  %v1960_v48 = vrot.slane %v1938_v45, 4  ;;  %v3839_v44 = vmov 0.0   ;;  %v3840_v46 = vmov 1.0  }
 0x2be   : > { %3084 = vmatprep.subr.mxu0 %v3839_v44  ;;  %v2461_v11 = vadd.s32 8, %v2460_v43  ;;  %v2454_v47 = vadd.s32 88, %v4110_v6  ;;  %3116 = vmatprep.mubr.msk.f32.mxu0 %vm3841_vm15, %v3839_v44 }
 0x2bf   : > { %v1956_v49 = vrot.slane %v1955_v14, 2  ;;  %v1961_v50 = vadd.f32 %v1960_v48, %v1938_v45  ;;  %v2451_v48 = vadd.s32 64, %v4110_v6 }
 0x2c0   : > { %vm2477_vm0 = vcmp.eq.s32.totalorder %v2458_v8, %v2461_v11  ;;  %vm2475_vm2 = vcmp.eq.s32.totalorder %v2456_v13, %v2461_v11  ;;  %vm2473_vm4 = vcmp.eq.s32.totalorder %v2454_v47, %v2461_v11  ;;  %vm2472_vm5 = vcmp.eq.s32.totalorder %v2453_v5, %v2461_v11 }
 0x2c1   : > { %v1957_v51 = vadd.f32 %v1956_v49, %v1955_v14  ;;  %v1962_v52 = vrot.slane %v1961_v50, 2  ;;  %3085 = vmatpush3.msk.msra.mxu0 %vm2477_vm0, %v3840_v46  ;;  %v2452_v14 = vadd.s32 72, %v4110_v6  ;;  %v2450_v49 = vadd.s32 56, %v4110_v6 }
 0x2c2   : > { %3086 = vmatprep.subr.mxu0 %v3839_v44  ;;  %vm2470_vm7 = vcmp.eq.s32.totalorder %v2451_v48, %v2461_v11 }
 0x2c3   : > { %v1958_v53 = vrot.slane %v1957_v51, 1  ;;  %v1963_v54 = vadd.f32 %v1962_v52, %v1961_v50  ;;  %vm2471_vm6 = vcmp.eq.s32.totalorder %v2452_v14, %v2461_v11  ;;  %v2449_v50 = vadd.s32 48, %v4110_v6 }
 0x2c4   : > { %vm2469_vm8 = vcmp.eq.s32.totalorder %v2450_v49, %v2461_v11  ;;  %v2447_v52 = vadd.s32 32, %v4110_v6 }
 0x2c5   : > { %v1959_v40 = vadd.f32 %v1958_v53, %v1957_v51  ;;  %v1964_v41 = vrot.slane %v1963_v54, 1  ;;  %v2448_v51 = vadd.s32 40, %v4110_v6  ;;  %vm2468_vm9 = vcmp.eq.s32.totalorder %v2449_v50, %v2461_v11 }
 0x2c6   : > { %vm2466_vm11 = vcmp.eq.s32.totalorder %v2447_v52, %v2461_v11  ;;  %v2446_v53 = vadd.s32 24, %v4110_v6 }
 0x2c7   : > { %v1969_v55 = vmul.f32 0.125, %v1959_v40  ;;  %v1965_v56 = vadd.f32 %v1964_v41, %v1963_v54  ;;  %vm2467_vm10 = vcmp.eq.s32.totalorder %v2448_v51, %v2461_v11  ;;  %v2445_v54 = vadd.s32 16, %v4110_v6 }
 0x2c8   : > { %vm2465_vm12 = vcmp.eq.s32.totalorder %v2446_v53, %v2461_v11  ;;  %v2444_v40 = vadd.s32 8, %v4110_v6 }
 0x2c9   : > { %v1973_v57 = vsub.f32 %v1936_v37, %v1969_v55  ;;  %v1970_v58 = vmul.f32 0.125, %v1965_v56  ;;  %vm2464_vm13 = vcmp.eq.s32.totalorder %v2445_v54, %v2461_v11 }
 0x2ca   : > { %vm2463_vm14 = vcmp.eq.s32.totalorder %v2444_v40, %v2461_v11 }
 0x2cb   : > { %v1977_v59 = vmul.f32 %v1973_v57, %v1973_v57  ;;  %v1974_v60 = vsub.f32 %v1938_v45, %v1970_v58  ;;  %v2455_v45 = vadd.s32 96, %v4110_v6 }
 0x2cd   : > { %v1991_v61 = vrot.slane %v1977_v59, 4  ;;  %v1978_v62 = vmul.f32 %v1974_v60, %v1974_v60  ;;  %vm2474_vm3 = vcmp.eq.s32.totalorder %v2455_v45, %v2461_v11 }
 0x2cf   : > { %v1992_v63 = vadd.f32 %v1991_v61, %v1977_v59  ;;  %v1997_v0 = vrot.slane %v1978_v62, 4 }
 0x2d1   : > { %v1993_v1 = vrot.slane %v1992_v63, 2  ;;  %v1998_v2 = vadd.f32 %v1997_v0, %v1978_v62 }
 0x2d3   : > { %v1994_v4 = vadd.f32 %v1993_v1, %v1992_v63  ;;  %v1999_v9 = vrot.slane %v1998_v2, 2 }
 0x2d5   : > { %v1995_v12 = vrot.slane %v1994_v4, 1  ;;  %v2000_v15 = vadd.f32 %v1999_v9, %v1998_v2 }
 0x2d7   : > { %v1996_v16 = vadd.f32 %v1995_v12, %v1994_v4  ;;  %v2001_v17 = vrot.slane %v2000_v15, 1 }
 0x2d9   : > { %v2005_v18 = vmul.f32 0.125, %v1996_v16  ;;  %v2002_v19 = vadd.f32 %v2001_v17, %v2000_v15  ;;  %v2583_v15 = vld [vmem:[%s437_s20] sm:$0xff] }
 0x2db   : > { %v2009_v20 = vadd.f32 1e-05, %v2005_v18  ;;  %v2006_v21 = vmul.f32 0.125, %v2002_v19 }
 0x2dd   : > { %3554 = vrsqrt.f32 %v2009_v20  ;;  %v2010_v22 = vadd.f32 1e-05, %v2006_v21 }
 0x2df   : > { %3556 = vrsqrt.f32 %v2010_v22 }
 0x2ea   : > { %v3555_v25 = vpop.eup %3554 }
 0x2eb   : > { %v2039_v26 = vmul.f32 %v3555_v25, %v2028_v23 }
 0x2ec   : > { %v3557_v27 = vpop.eup %3556 }
 0x2ed   : > { %v2052_v28 = vrot.slane %v2039_v26, %v4113_v7  ;;  %v2040_v30 = vmul.f32 %v3557_v27, %v2032_v24 }
 0x2ef   : > { %v2059_v31 = vmul.f32 %v2052_v28, %v1973_v57  ;;  %v2056_v32 = vrot.slane %v2040_v30, %v4113_v7  ;;  %v2457_v7 = vadd.s32 112, %v4110_v6  ;;  %v2955_v6 = vld [vmem:[%s4259_s8] ss:$0 sm:$0xff] }
 0x2f1   : > { %v2085_v34 = vadd.f32 %v2074_v29, %v2059_v31  ;;  %v2060_v35 = vmul.f32 %v2056_v32, %v1974_v60  ;;  %vm2476_vm1 = vcmp.eq.s32.totalorder %v2457_v7, %v2461_v11 }
 0x2f2   : > { %3087 = vmatpush3.msk.msra.mxu0 %vm2476_vm1, %v3840_v46 }
 0x2f3   : > { %v2086_v36 = vadd.f32 %v2078_v33, %v2060_v35  ;;  %v2089_v37 = vmul.f32 0.2, %v2085_v34  ;;  %3088 = vmatprep.subr.mxu0 %v3839_v44 }
 0x2f4   : > { %3089 = vmatpush3.msk.msra.mxu0 %vm2475_vm2, %v3840_v46 }
 0x2f5   : > { %v2090_v3 = vmul.f32 0.2, %v2086_v36  ;;  %v2093_v10 = vmax.f32 %v2085_v34, %v2089_v37  ;;  %3090 = vmatprep.subr.mxu0 %v3839_v44 }
 0x2f6   : > { %3091 = vmatpush3.msk.msra.mxu0 %vm2474_vm3, %v3840_v46 }
 0x2f7   : > { %v2094_v38 = vmax.f32 %v2086_v36, %v2090_v3  ;;  %v2097_v42 = vpack.c.bf16 %v2093_v10, %v2093_v10  ;;  %3092 = vmatprep.subr.mxu0 %v3839_v44 }
 0x2f8   : > { %3093 = vmatpush3.msk.msra.mxu0 %vm2473_vm4, %v3840_v46 }
 0x2f9   : > { %v2098_v39 = vpack.c.bf16 %v2094_v38, %v2094_v38  ;;  %3094 = vmatprep.subr.mxu0 %v3839_v44 }
 0x2fa   : > { %3095 = vmatpush3.msk.msra.mxu0 %vm2472_vm5, %v3840_v46 }
 0x2fb   : > { %2434 = vmatprep.mubr.bf16.mxu1 %v2098_v39  ;;  %3096 = vmatprep.subr.mxu0 %v3839_v44 }
 0x2fc   : > { %2435 = vmatmul.mubr.bf16.vlgmr.msra.gmra.mxu1 %v2097_v42  ;;  %3097 = vmatpush3.msk.msra.mxu0 %vm2471_vm6, %v3840_v46 }
 0x2fd   : > { %3098 = vmatprep.subr.mxu0 %v3839_v44 }
 0x2fe   : > { %3099 = vmatpush3.msk.msra.mxu0 %vm2470_vm7, %v3840_v46 }
 0x2ff   : > { %3100 = vmatprep.subr.mxu0 %v3839_v44 }
 0x300   : > { %3101 = vmatpush3.msk.msra.mxu0 %vm2469_vm8, %v3840_v46 }
 0x301   : > { %3102 = vmatprep.subr.mxu0 %v3839_v44 }
 0x302   : > { %3103 = vmatpush3.msk.msra.mxu0 %vm2468_vm9, %v3840_v46 }
 0x303   : > { %3104 = vmatprep.subr.mxu0 %v3839_v44 }
 0x304   : > { %3105 = vmatpush3.msk.msra.mxu0 %vm2467_vm10, %v3840_v46 }
 0x305   : > { %3106 = vmatprep.subr.mxu0 %v3839_v44 }
 0x306   : > { %3107 = vmatpush3.msk.msra.mxu0 %vm2466_vm11, %v3840_v46 }
 0x307   : > { %3108 = vmatprep.subr.mxu0 %v3839_v44 }
 0x308   : > { %3109 = vmatpush3.msk.msra.mxu0 %vm2465_vm12, %v3840_v46 }
 0x309   : > { %3110 = vmatprep.subr.mxu0 %v3839_v44 }
 0x30a   : > { %3111 = vmatpush3.msk.msra.mxu0 %vm2464_vm13, %v3840_v46 }
 0x30b   : > { %3112 = vmatprep.subr.mxu0 %v3839_v44 }
 0x30c   : > { %3113 = vmatpush3.msk.msra.mxu0 %vm2463_vm14, %v3840_v46 }
 0x30d   : > { %3114 = vmatprep.subr.mxu0 %v3839_v44 }
 0x30e   : > { %3115 = vmatpush3.msra.mxu0 %v3839_v44 }
 0x37c   : > { %v3039_v41 = vpop.f32.mrf.mxu0 }
 0x37e   : > { %v3040_v55 = vpop.f32.mrf.mxu0 }
 0x37f   : > { %v3041_v58 = vadd.f32 %v3040_v55, %v3039_v41 }
 0x380   : > { %v3042_v56 = vpop.f32.mrf.mxu0 }
 0x381   : > { %v2397_v61 = vadd.f32 %v3041_v58, %v2955_v6 }
 0x382   : > { %v3043_v57 = vpop.f32.mrf.mxu0 }
 0x3bc   : > { %v3061_v59 = vpop.f32.mrf.mxu1 }
 0x3be   : > { %v3062_v60 = vpop.f32.mrf.mxu1 }
 0x3bf   : > { %v3063_v62 = vadd.f32 %v3062_v60, %v3061_v59 }
 0x3c0   : > { %v3064_v63 = vpop.f32.mrf.mxu1 }
 0x3c1   : > { %v2437_v0 = vadd.f32 %v3063_v62, %v2397_v61 }
 0x3c2   : > { %v3065_v1 = vpop.f32.mrf.mxu1 }
 0x3c3   : > { %3117 = vmatmul.mubr.f32.vlgmr.msra.gmra.mxu0 %v2437_v0 }
 0x483   : > { %v2576_v2 = vpop.f32.mrf.mxu0 }
 0x484   : > { %v2580_v4 = vmul.f32 0.5, %v2576_v2 }
 0x485   : > { %v3118_v9 = vpop.f32.mrf.mxu0 }
 0x486   : > { %v2581_v12 = vmul.f32 1.442695, %v2580_v4 }
 0x488   : > { %3558 = vpow2.f32 %v2581_v12 }
 0x495   : > { %v3559_v16 = vpop.eup %3558 }
 0x496   : > { %v2584_v17 = vmul.f32 %v3559_v16, %v2583_v15 }
 0x498   : > { %v2585_v18 = vadd.f32 %v2584_v17, %v2437_v0 }
 0x49a   : > { %2586 = vst [vmem:[%s478_s15] sm:$0xff] %v2585_v18 }
 0x49b   : > { %3759 = shalt.err (!%p3756_p1)
}
 0x49c   : > { %s3760_s12 = scalar_lea.hbm %s2599_s10, 128  ;;  %s3764_s18 = scalar_lea.hbm %s4313_s11, 512 }
 0x49d   : > { %p3761_p8 = scmp.ne.s32.totalorder %s2599_s10, %s3760_s12  ;;  %p3765_p12 = scmp.lt.s32.totalorder %s2599_s10, %s4313_s11 }
 0x49e   : > { %p3766_p7 = scmp.lt.s32.totalorder %s3764_s18, %s3760_s12 }
 0x49f   : > { %p3762_p0 = pnand %p3761_p8, %p4314_p6 }
 0x4a0   : > { %p3767_p5 = por %p3766_p7, %p3765_p12 }
 0x4a1   : > { %p3763_p3 = pneg %p3762_p0 }
 0x4a3   : > { %p3768_p9 = pnand %p3767_p5, %p3763_p3 }
 0x4a5   : > { %3771 = shalt.err (!%p3768_p9)
}
 0x4a6   : > { %3143 = dma.vmem_to_hbm [thread:$0]  (%p4314_p6), %s2602_s26, 128, %s2599_s10, %s2588_s16  }
 0x4a7 PF: > { %s4315_s1 = sld [smem:[#allocation23_spill]] }
 0x4a8   : > { %s4316_s13 = sld [smem:[#allocation21_spill]] }
 0x4a9   : > { %s4317_s3 = sld [smem:[#allocation26_spill]] }
 0x4ad   : > { %p3183_p4 = scmp.ge.s32.totalorder %s4315_s1, 2 }
 0x4ae   : > { %s2613_s28 = sand.u32 1, %s4316_s13  }
 0x4af   : > { %p4318_p10 = scmp.ne.s32.totalorder %s4317_s3, 0  ;;  %s2614_s15 = scalar_lea.sflag [#allocation4], %s2613_s28 }
 0x4b1   : > { %p3169_p11 = pnand %p3183_p4, %p4318_p10 }
 0x4b3   : > { %p3170_p13 = pneg %p3169_p11 }
 0x4b5   : > { %3809 = dma.done.wait (%p3170_p13), %s2614_s15, 128  }
 0x4b6   : > { %3811 = vsyncadd (%p3170_p13), %s2614_s15, 4294967168  ;;  %s4319_s16 = sld [smem:[#allocation24_spill]]  ;;  %s4322_s13 = smov %s3818_s14 }
 0x4b7   : > { %s4320_s21 = sld [smem:[#allocation22_spill]] }
 0x4b8   : > { %s4321_s15 = sld [smem:[#allocation25_spill]] }
 0x4bc   : > { %p26_p2 = scmp.ge.s32.totalorder %s4319_s16, 6  }
 0x4bd   : > { %s4323_s14 = smov %s4320_s21 }
 0x4be   :  { %28 = sbr.rel (!%p26_p2) target bundleno = 12 (0xc), region = 136 }
 0x4c3   :  { %2619 = vsyncpa [#allocation3], 1 }
 0x4c4   :  { %2621 = vsyncpa [#allocation3 + $0x1], 1 }
 0x4c5   :  { %2622 = vsyncpa [#allocation6], 1 }
 0x4c6   :  { %2623 = vsyncpa [#allocation9], 1 }
 0x4c7   :  { %2624 = vsyncpa [#allocation12], 1 }
 0x4c8   :  { %2625 = vsyncpa [#allocation4], 1 }
 0x4c9   :  { %2627 = vsyncpa [#allocation4 + $0x1], 1 }

</bundles_post_ra>
